<compile_context>
chip_gen: v7x
topology: tpu7x:2x2x1
jax: 0.10.0
libtpu: 0.0.40
codegen_flags: <defaults>
</compile_context>

<pallas_src>
import functools
import math

import jax
import jax.numpy as jnp
from jax.experimental import pallas as pl
from jax.experimental.pallas import tpu as pltpu


def _round_up(x: int, m: int) -> int:
    return ((x + m - 1) // m) * m


def _vmem_capacity_bytes() -> int:
    """Physical VMEM per TensorCore; conservative fallback = v7x's 64 MiB."""
    try:
        info = pltpu.get_tpu_info()
        cap = getattr(info, "vmem_capacity_bytes", None)
        if cap:
            return int(cap)
    except Exception:
        pass
    return 64 << 20


def _lstm_recurrent_kernel(xp_ref, whh_hbm_ref, y_ref,
                           h_ref, c_ref, whh_vmem_ref, copy_sem,
                           *, unroll):
    """One grid step = one (batch tile, time chunk).

    xp_ref:       (Tc, Bt, 4Hp)  precomputed x @ W_ih^T + bias (stream dtype)
    whh_hbm_ref:  (Hp, 4Hp)      recurrent weight (transposed), left in HBM
    y_ref:        (Tc, Bt, Hp)   output hidden states for the chunk
    h_ref, c_ref: (Bt, Hp)       f32 state carried across time chunks
    whh_vmem_ref: (Hp, 4Hp)      single-buffered resident copy of W_hh^T
    """
    t_idx = pl.program_id(1)

    # New batch tile -> reset recurrent state (h0 = c0 = 0) and (re)load the
    # constant recurrent weight into its single-buffered VMEM slot.
    @pl.when(t_idx == 0)
    def _():
        h_ref[...] = jnp.zeros_like(h_ref)
        c_ref[...] = jnp.zeros_like(c_ref)
        cp = pltpu.make_async_copy(whh_hbm_ref, whh_vmem_ref, copy_sem)
        cp.start()
        cp.wait()

    Tc = xp_ref.shape[0]
    Hp = h_ref.shape[-1]
    whh_t = whh_vmem_ref[...]            # (Hp, 4Hp), loaded once per chunk

    def sigmoid(z):                      # 1 EUP push instead of exp + recip
        return 0.5 * (jnp.tanh(0.5 * z) + 1.0)

    def step(t, carry):
        h, c = carry
        # Serial critical path: bf16 MXU matmul with f32 accumulation.
        gates = xp_ref[t].astype(jnp.float32) + jnp.dot(
            h.astype(whh_t.dtype), whh_t, preferred_element_type=jnp.float32)
        # PyTorch gate order: input, forget, cell(g), output. Each gate is a
        # contiguous, 128-lane-aligned block of width Hp.
        i_g = sigmoid(gates[:, 0 * Hp:1 * Hp])
        f_g = sigmoid(gates[:, 1 * Hp:2 * Hp])
        g_g = jnp.tanh(gates[:, 2 * Hp:3 * Hp])
        o_g = sigmoid(gates[:, 3 * Hp:4 * Hp])
        c_new = f_g * c + i_g * g_g
        h_new = o_g * jnp.tanh(c_new)
        y_ref[t] = h_new.astype(y_ref.dtype)
        return h_new, c_new

    h_fin, c_fin = jax.lax.fori_loop(0, Tc, step, (h_ref[...], c_ref[...]),
                                     unroll=unroll)
    h_ref[...] = h_fin
    c_ref[...] = c_fin


@functools.partial(
    jax.jit, static_argnames=("time_chunk", "batch_tile", "stream_dtype"))
def lstm_forward(x, w_ih, w_hh, b_ih, b_hh, *,
                 time_chunk=None, batch_tile=None, stream_dtype=jnp.bfloat16):
    """x: (T, B, D) f32.  w_ih: (4H, D), w_hh: (4H, H), b_*: (4H,).

    Returns y: (T, B, H), matching torch.nn.LSTM with zero initial state.
    """
    T, B, D = x.shape
    H = w_hh.shape[1]

    # --- Lane/sublane-aligned padded sizes.
    Hp = _round_up(H, 128)
    B8 = _round_up(B, 8)
    if batch_tile is None:
        # Two batch tiles when the batch is big enough -> the "parallel"
        # batch grid axis can be sharded across v7x's two TensorCores.
        Bt = B8 if B8 <= 8 else _round_up((B8 + 1) // 2, 8)
    else:
        Bt = _round_up(max(1, min(int(batch_tile), B8)), 8)
    Bp = _round_up(B8, Bt)
    n_btiles = Bp // Bt

    stream_dtype = jnp.dtype(stream_dtype)
    stream_bytes = stream_dtype.itemsize
    out_dtype = x.dtype
    out_bytes = jnp.dtype(out_dtype).itemsize

    # --- Time chunk: big enough to amortize the ~0.35 us/grid-step overhead
    # and give the DMA engine chunk-sized transfers; Tc = T for short seqs.
    if time_chunk is None:
        per_step_bytes = Bt * (4 * Hp * stream_bytes + Hp * out_bytes)
        Tc = max(1, min(T, (2 << 20) // max(1, per_step_bytes), 512))
    else:
        Tc = max(1, min(int(time_chunk), T))
    T_pad = _round_up(T, Tc)
    n_chunks = T_pad // Tc
    unroll = True if Tc <= 16 else 8

    # --- Pad parameters so each gate occupies a contiguous, 128-lane-aligned
    # block of width Hp; padded rows/cols are zero so padded state stays 0.
    pad_h = Hp - H
    w_ih_p = jnp.pad(w_ih.astype(jnp.float32).reshape(4, H, D),
                     ((0, 0), (0, pad_h), (0, 0))).reshape(4 * Hp, D)
    w_hh_p = jnp.pad(w_hh.astype(jnp.float32).reshape(4, H, H),
                     ((0, 0), (0, pad_h), (0, pad_h))).reshape(4 * Hp, Hp)
    bias_p = jnp.pad((b_ih + b_hh).astype(jnp.float32).reshape(4, H),
                     ((0, 0), (0, pad_h))).reshape(4 * Hp)

    # --- Pad activations (time + batch) and hoist the input projection:
    # one big MXU-efficient matmul with the bias folded in.
    x_p = jnp.pad(x.astype(jnp.float32),
                  ((0, T_pad - T), (0, Bp - B), (0, 0)))
    x_proj = (jnp.einsum("tbd,gd->tbg", x_p, w_ih_p,
                         preferred_element_type=jnp.float32)
              + bias_p).astype(stream_dtype)               # (T_pad, Bp, 4Hp)
    whh_t = jnp.transpose(w_hh_p).astype(stream_dtype)     # (Hp, 4Hp)

    # --- Explicit VMEM budget (no double counting), capped at physical VMEM.
    vmem_needed = (
        2 * Tc * Bt * 4 * Hp * stream_bytes   # x_proj chunk (double-buffered)
        + 2 * Tc * Bt * Hp * out_bytes        # y chunk (double-buffered)
        + Hp * 4 * Hp * stream_bytes          # resident W_hh^T (single buffer)
        + 2 * Bt * Hp * 4                     # h/c f32 state
    )
    vmem_limit = int(min(max(vmem_needed + (4 << 20), 16 << 20),
                         _vmem_capacity_bytes()))

    grid_spec = pltpu.PrefetchScalarGridSpec(
        num_scalar_prefetch=0,
        grid=(n_btiles, n_chunks),
        in_specs=[
            pl.BlockSpec((Tc, Bt, 4 * Hp), lambda b, t: (t, b, 0)),  # x_proj
            pl.BlockSpec(memory_space=pl.ANY),                       # W_hh^T
        ],
        out_specs=pl.BlockSpec((Tc, Bt, Hp), lambda b, t: (t, b, 0)),
        scratch_shapes=[
            pltpu.VMEM((Bt, Hp), jnp.float32),        # h state
            pltpu.VMEM((Bt, Hp), jnp.float32),        # c state
            pltpu.VMEM((Hp, 4 * Hp), stream_dtype),   # resident W_hh^T
            pltpu.SemaphoreType.DMA,                  # weight-copy semaphore
        ],
    )

    y = pl.pallas_call(
        functools.partial(_lstm_recurrent_kernel, unroll=unroll),
        out_shape=jax.ShapeDtypeStruct((T_pad, Bp, Hp), out_dtype),
        grid_spec=grid_spec,
        compiler_params=pltpu.CompilerParams(
            # Batch tiles are independent ("parallel"); the time-chunk axis is
            # a sequential recurrence ("arbitrary").
            dimension_semantics=("parallel", "arbitrary"),
            vmem_limit_bytes=vmem_limit,
        ),
    )(x_proj, whh_t)

    # TODO(synk): nn.LSTM also returns (h_n, c_n); the module under test only
    # uses y, so the final states (which padded time steps would perturb) are
    # intentionally not exposed.
    return y[:T, :B, :H]


def lstm_reference(x, w_ih, w_hh, b_ih, b_hh):
    """Pure-JAX reference (lax.scan) matching PyTorch nn.LSTM semantics."""
    T, B, D = x.shape
    H = w_hh.shape[1]
    h0 = jnp.zeros((B, H), jnp.float32)
    c0 = jnp.zeros((B, H), jnp.float32)

    def step(carry, x_t):
        h, c = carry
        gates = x_t @ w_ih.T + b_ih + h @ w_hh.T + b_hh
        i_g = jax.nn.sigmoid(gates[:, 0 * H:1 * H])
        f_g = jax.nn.sigmoid(gates[:, 1 * H:2 * H])
        g_g = jnp.tanh(gates[:, 2 * H:3 * H])
        o_g = jax.nn.sigmoid(gates[:, 3 * H:4 * H])
        c_new = f_g * c + i_g * g_g
        h_new = o_g * jnp.tanh(c_new)
        return (h_new, c_new), h_new

    _, ys = jax.lax.scan(step, (h0, c0), x)
    return ys


def xavier_uniform(key, shape, dtype=jnp.float32):
    fan_out, fan_in = shape
    limit = math.sqrt(6.0 / (fan_in + fan_out))
    return jax.random.uniform(key, shape, dtype, minval=-limit, maxval=limit)


def _make_case(key, T, B, D, H):
    kx, kih, khh, kbih, kbhh = jax.random.split(key, 5)
    x = jax.random.normal(kx, (T, B, D), jnp.float32)
    # Parameter init mirroring the module: xavier_uniform_ on the weights,
    # PyTorch default uniform(-1/sqrt(H), 1/sqrt(H)) for the biases.
    w_ih = xavier_uniform(kih, (4 * H, D))
    w_hh = xavier_uniform(khh, (4 * H, H))
    bound = 1.0 / math.sqrt(H)
    b_ih = jax.random.uniform(kbih, (4 * H,), jnp.float32, -bound, bound)
    b_hh = jax.random.uniform(kbhh, (4 * H,), jnp.float32, -bound, bound)
    return x, w_ih, w_hh, b_ih, b_hh


if __name__ == "__main__":
    SEQ, BATCH, INPUT_DIM, HIDDEN_DIM = 8, 2, 16, 32
    root = jax.random.PRNGKey(0)
    k1, k2 = jax.random.split(root)

    # Case 1: module's toy shapes, default config (bf16 streaming, Tc = T so
    # grid collapses to a single time chunk).
    x, w_ih, w_hh, b_ih, b_hh = _make_case(k1, SEQ, BATCH, INPUT_DIM, HIDDEN_DIM)
    y = lstm_forward(x, w_ih, w_hh, b_ih, b_hh)
    jax.block_until_ready(y)
    y_ref = lstm_reference(x, w_ih, w_hh, b_ih, b_hh)
    assert y.shape == (SEQ, BATCH, HIDDEN_DIM)
    assert jnp.allclose(y, y_ref, atol=2e-2, rtol=2e-2), float(
        jnp.max(jnp.abs(y - y_ref)))

    # Case 1b: f32 streaming + small time chunks -> exercises the cross-chunk
    # h/c carry and time padding, checked at tight tolerance.
    y32 = lstm_forward(x, w_ih, w_hh, b_ih, b_hh,
                       time_chunk=3, stream_dtype=jnp.float32)
    jax.block_until_ready(y32)
    assert jnp.allclose(y32, y_ref, atol=1e-4, rtol=1e-4)

    # Case 2: larger batch -> exercises the "parallel" batch grid axis
    # (2 batch tiles) plus time chunking, f32 streaming at tight tolerance.
    x2, w_ih2, w_hh2, b_ih2, b_hh2 = _make_case(k2, 12, 16, INPUT_DIM, HIDDEN_DIM)
    y2 = lstm_forward(x2, w_ih2, w_hh2, b_ih2, b_hh2,
                      time_chunk=4, stream_dtype=jnp.float32)
    jax.block_until_ready(y2)
    y2_ref = lstm_reference(x2, w_ih2, w_hh2, b_ih2, b_hh2)
    assert y2.shape == (12, 16, HIDDEN_DIM)
    assert jnp.allclose(y2, y2_ref, atol=1e-4, rtol=1e-4)

    print("KERNEL_OK")
</pallas_src>

<mosaic_0001>
module attributes {stable_mosaic.version = 11 : i64} {
  func.func @_lstm_recurrent_kernel(%arg0: i32, %arg1: i32, %arg2: memref<8x8x512xbf16, #tpu.memory_space<vmem>>, %arg3: memref<128x512xbf16, #tpu.memory_space<any>>, %arg4: memref<8x8x128xf32, #tpu.memory_space<vmem>>, %arg5: memref<8x128xf32, #tpu.memory_space<vmem>>, %arg6: memref<8x128xf32, #tpu.memory_space<vmem>>, %arg7: memref<128x512xbf16, #tpu.memory_space<vmem>>, %arg8: memref<!tpu.dma_semaphore, #tpu.memory_space<semaphore_mem>>) attributes {dimension_semantics = [#tpu.dimension_semantics<parallel>, #tpu.dimension_semantics<arbitrary>], iteration_bounds = array<i64: 1, 1>, scalar_prefetch = 0 : i64, scratch_operands = 4 : i64, tpu.core_type = #tpu.core_type<tc>, window_params = [{transform_indices = @transform_0, window_bounds = array<i64: 8, 8, 512>}, {}, {transform_indices = @transform_2, window_bounds = array<i64: 8, 8, 128>}]} {
    %c0_i32 = arith.constant 0 : i32
    %0 = arith.cmpi eq, %arg1, %c0_i32 : i32
    %1 = arith.extui %0 : i1 to i32
    %c0_i32_0 = arith.constant 0 : i32
    %2 = arith.cmpi ne, %1, %c0_i32_0 : i32
    scf.if %2 {
      %cst_122 = arith.constant 0.000000e+00 : f32
      %344 = vector.broadcast %cst_122 : f32 to vector<8x128xf32>
      %c0_123 = arith.constant 0 : index
      %c0_124 = arith.constant 0 : index
      %345 = vector.load %arg5[%c0_123, %c0_124] : memref<8x128xf32, #tpu.memory_space<vmem>>, vector<8x128xf32>
      tpu.vector_store %arg5[%c0_123, %c0_124], %344 {strides = array<i32>} : memref<8x128xf32, #tpu.memory_space<vmem>>, vector<8x128xf32>,
      %cst_125 = arith.constant 0.000000e+00 : f32
      %346 = vector.broadcast %cst_125 : f32 to vector<8x128xf32>
      %c0_126 = arith.constant 0 : index
      %c0_127 = arith.constant 0 : index
      %347 = vector.load %arg6[%c0_126, %c0_127] : memref<8x128xf32, #tpu.memory_space<vmem>>, vector<8x128xf32>
      tpu.vector_store %arg6[%c0_126, %c0_127], %346 {strides = array<i32>} : memref<8x128xf32, #tpu.memory_space<vmem>>, vector<8x128xf32>,
      tpu.enqueue_dma source(%arg3 : memref<128x512xbf16, #tpu.memory_space<any>>) target(%arg7 : memref<128x512xbf16, #tpu.memory_space<vmem>>) target_semaphore(%arg8 : memref<!tpu.dma_semaphore, #tpu.memory_space<semaphore_mem>>)
      tpu.wait_dma2 semaphore(%arg8 : memref<!tpu.dma_semaphore, #tpu.memory_space<semaphore_mem>>) src(%arg3 : memref<128x512xbf16, #tpu.memory_space<any>>) dst(%arg7 : memref<128x512xbf16, #tpu.memory_space<vmem>>)
    } else {
    }
    %c0 = arith.constant 0 : index
    %c0_1 = arith.constant 0 : index
    %3 = vector.load %arg7[%c0, %c0_1] : memref<128x512xbf16, #tpu.memory_space<vmem>>, vector<128x512xbf16>
    %c0_2 = arith.constant 0 : index
    %c0_3 = arith.constant 0 : index
    %4 = vector.load %arg5[%c0_2, %c0_3] : memref<8x128xf32, #tpu.memory_space<vmem>>, vector<8x128xf32>
    %c0_4 = arith.constant 0 : index
    %c0_5 = arith.constant 0 : index
    %5 = vector.load %arg6[%c0_4, %c0_5] : memref<8x128xf32, #tpu.memory_space<vmem>>, vector<8x128xf32>
    %c0_i32_6 = arith.constant 0 : i32
    %6 = arith.index_cast %c0_i32_6 : i32 to index
    %c0_7 = arith.constant 0 : index
    %c0_8 = arith.constant 0 : index
    %7 = vector.load %arg2[%6, %c0_7, %c0_8] : memref<8x8x512xbf16, #tpu.memory_space<vmem>>, vector<1x8x512xbf16>
    %8 = vector.shape_cast %7 : vector<1x8x512xbf16> to vector<8x512xbf16>
    %9 = arith.extf %8 : vector<8x512xbf16> to vector<8x512xf32>
    %10 = arith.truncf %4 : vector<8x128xf32> to vector<8x128xbf16>
    %cst = arith.constant dense<0.000000e+00> : vector<8x512xf32>
    %11 = tpu.matmul %10, %3, %cst {dimension_numbers = #tpu.dot_dimension_numbers<[1], [0], [0], [1], [0, 0, 1, 1], [], []>} : vector<8x128xbf16>, vector<128x512xbf16>, vector<8x512xf32> -> vector<8x512xf32>
    %12 = arith.addf %9, %11 : vector<8x512xf32>
    %13 = vector.extract_strided_slice %12 {offsets = [0, 0], sizes = [8, 128], strides = [1, 1]} : vector<8x512xf32> to vector<8x128xf32>
    %cst_9 = arith.constant 5.000000e-01 : f32
    %14 = vector.broadcast %cst_9 : f32 to vector<8x128xf32>
    %15 = arith.mulf %14, %13 : vector<8x128xf32>
    %16 = math.tanh %15 : vector<8x128xf32>
    %cst_10 = arith.constant 1.000000e+00 : f32
    %17 = vector.broadcast %cst_10 : f32 to vector<8x128xf32>
    %18 = arith.addf %16, %17 : vector<8x128xf32>
    %cst_11 = arith.constant 5.000000e-01 : f32
    %19 = vector.broadcast %cst_11 : f32 to vector<8x128xf32>
    %20 = arith.mulf %19, %18 : vector<8x128xf32>
    %21 = vector.extract_strided_slice %12 {offsets = [0, 128], sizes = [8, 128], strides = [1, 1]} : vector<8x512xf32> to vector<8x128xf32>
    %cst_12 = arith.constant 5.000000e-01 : f32
    %22 = vector.broadcast %cst_12 : f32 to vector<8x128xf32>
    %23 = arith.mulf %22, %21 : vector<8x128xf32>
    %24 = math.tanh %23 : vector<8x128xf32>
    %cst_13 = arith.constant 1.000000e+00 : f32
    %25 = vector.broadcast %cst_13 : f32 to vector<8x128xf32>
    %26 = arith.addf %24, %25 : vector<8x128xf32>
    %cst_14 = arith.constant 5.000000e-01 : f32
    %27 = vector.broadcast %cst_14 : f32 to vector<8x128xf32>
    %28 = arith.mulf %27, %26 : vector<8x128xf32>
    %29 = vector.extract_strided_slice %12 {offsets = [0, 256], sizes = [8, 128], strides = [1, 1]} : vector<8x512xf32> to vector<8x128xf32>
    %30 = math.tanh %29 : vector<8x128xf32>
    %31 = vector.extract_strided_slice %12 {offsets = [0, 384], sizes = [8, 128], strides = [1, 1]} : vector<8x512xf32> to vector<8x128xf32>
    %cst_15 = arith.constant 5.000000e-01 : f32
    %32 = vector.broadcast %cst_15 : f32 to vector<8x128xf32>
    %33 = arith.mulf %32, %31 : vector<8x128xf32>
    %34 = math.tanh %33 : vector<8x128xf32>
    %cst_16 = arith.constant 1.000000e+00 : f32
    %35 = vector.broadcast %cst_16 : f32 to vector<8x128xf32>
    %36 = arith.addf %34, %35 : vector<8x128xf32>
    %cst_17 = arith.constant 5.000000e-01 : f32
    %37 = vector.broadcast %cst_17 : f32 to vector<8x128xf32>
    %38 = arith.mulf %37, %36 : vector<8x128xf32>
    %39 = arith.mulf %28, %5 : vector<8x128xf32>
    %40 = arith.mulf %20, %30 : vector<8x128xf32>
    %41 = arith.addf %39, %40 : vector<8x128xf32>
    %42 = math.tanh %41 : vector<8x128xf32>
    %43 = arith.mulf %38, %42 : vector<8x128xf32>
    %44 = arith.index_cast %c0_i32_6 : i32 to index
    %c0_18 = arith.constant 0 : index
    %c0_19 = arith.constant 0 : index
    %45 = vector.load %arg4[%44, %c0_18, %c0_19] : memref<8x8x128xf32, #tpu.memory_space<vmem>>, vector<1x8x128xf32>
    %46 = vector.shape_cast %45 : vector<1x8x128xf32> to vector<8x128xf32>
    %47 = vector.shape_cast %43 : vector<8x128xf32> to vector<1x8x128xf32>
    tpu.vector_store %arg4[%44, %c0_18, %c0_19], %47 {strides = array<i32>} : memref<8x8x128xf32, #tpu.memory_space<vmem>>, vector<1x8x128xf32>,
    %c1_i32 = arith.constant 1 : i32
    %48 = arith.index_cast %c1_i32 : i32 to index
    %c0_20 = arith.constant 0 : index
    %c0_21 = arith.constant 0 : index
    %49 = vector.load %arg2[%48, %c0_20, %c0_21] : memref<8x8x512xbf16, #tpu.memory_space<vmem>>, vector<1x8x512xbf16>
    %50 = vector.shape_cast %49 : vector<1x8x512xbf16> to vector<8x512xbf16>
    %51 = arith.extf %50 : vector<8x512xbf16> to vector<8x512xf32>
    %52 = arith.truncf %43 : vector<8x128xf32> to vector<8x128xbf16>
    %cst_22 = arith.constant dense<0.000000e+00> : vector<8x512xf32>
    %53 = tpu.matmul %52, %3, %cst_22 {dimension_numbers = #tpu.dot_dimension_numbers<[1], [0], [0], [1], [0, 0, 1, 1], [], []>} : vector<8x128xbf16>, vector<128x512xbf16>, vector<8x512xf32> -> vector<8x512xf32>
    %54 = arith.addf %51, %53 : vector<8x512xf32>
    %55 = vector.extract_strided_slice %54 {offsets = [0, 0], sizes = [8, 128], strides = [1, 1]} : vector<8x512xf32> to vector<8x128xf32>
    %cst_23 = arith.constant 5.000000e-01 : f32
    %56 = vector.broadcast %cst_23 : f32 to vector<8x128xf32>
    %57 = arith.mulf %56, %55 : vector<8x128xf32>
    %58 = math.tanh %57 : vector<8x128xf32>
    %cst_24 = arith.constant 1.000000e+00 : f32
    %59 = vector.broadcast %cst_24 : f32 to vector<8x128xf32>
    %60 = arith.addf %58, %59 : vector<8x128xf32>
    %cst_25 = arith.constant 5.000000e-01 : f32
    %61 = vector.broadcast %cst_25 : f32 to vector<8x128xf32>
    %62 = arith.mulf %61, %60 : vector<8x128xf32>
    %63 = vector.extract_strided_slice %54 {offsets = [0, 128], sizes = [8, 128], strides = [1, 1]} : vector<8x512xf32> to vector<8x128xf32>
    %cst_26 = arith.constant 5.000000e-01 : f32
    %64 = vector.broadcast %cst_26 : f32 to vector<8x128xf32>
    %65 = arith.mulf %64, %63 : vector<8x128xf32>
    %66 = math.tanh %65 : vector<8x128xf32>
    %cst_27 = arith.constant 1.000000e+00 : f32
    %67 = vector.broadcast %cst_27 : f32 to vector<8x128xf32>
    %68 = arith.addf %66, %67 : vector<8x128xf32>
    %cst_28 = arith.constant 5.000000e-01 : f32
    %69 = vector.broadcast %cst_28 : f32 to vector<8x128xf32>
    %70 = arith.mulf %69, %68 : vector<8x128xf32>
    %71 = vector.extract_strided_slice %54 {offsets = [0, 256], sizes = [8, 128], strides = [1, 1]} : vector<8x512xf32> to vector<8x128xf32>
    %72 = math.tanh %71 : vector<8x128xf32>
    %73 = vector.extract_strided_slice %54 {offsets = [0, 384], sizes = [8, 128], strides = [1, 1]} : vector<8x512xf32> to vector<8x128xf32>
    %cst_29 = arith.constant 5.000000e-01 : f32
    %74 = vector.broadcast %cst_29 : f32 to vector<8x128xf32>
    %75 = arith.mulf %74, %73 : vector<8x128xf32>
    %76 = math.tanh %75 : vector<8x128xf32>
    %cst_30 = arith.constant 1.000000e+00 : f32
    %77 = vector.broadcast %cst_30 : f32 to vector<8x128xf32>
    %78 = arith.addf %76, %77 : vector<8x128xf32>
    %cst_31 = arith.constant 5.000000e-01 : f32
    %79 = vector.broadcast %cst_31 : f32 to vector<8x128xf32>
    %80 = arith.mulf %79, %78 : vector<8x128xf32>
    %81 = arith.mulf %70, %41 : vector<8x128xf32>
    %82 = arith.mulf %62, %72 : vector<8x128xf32>
    %83 = arith.addf %81, %82 : vector<8x128xf32>
    %84 = math.tanh %83 : vector<8x128xf32>
    %85 = arith.mulf %80, %84 : vector<8x128xf32>
    %86 = arith.index_cast %c1_i32 : i32 to index
    %c0_32 = arith.constant 0 : index
    %c0_33 = arith.constant 0 : index
    %87 = vector.load %arg4[%86, %c0_32, %c0_33] : memref<8x8x128xf32, #tpu.memory_space<vmem>>, vector<1x8x128xf32>
    %88 = vector.shape_cast %87 : vector<1x8x128xf32> to vector<8x128xf32>
    %89 = vector.shape_cast %85 : vector<8x128xf32> to vector<1x8x128xf32>
    tpu.vector_store %arg4[%86, %c0_32, %c0_33], %89 {strides = array<i32>} : memref<8x8x128xf32, #tpu.memory_space<vmem>>, vector<1x8x128xf32>,
    %c2_i32 = arith.constant 2 : i32
    %90 = arith.index_cast %c2_i32 : i32 to index
    %c0_34 = arith.constant 0 : index
    %c0_35 = arith.constant 0 : index
    %91 = vector.load %arg2[%90, %c0_34, %c0_35] : memref<8x8x512xbf16, #tpu.memory_space<vmem>>, vector<1x8x512xbf16>
    %92 = vector.shape_cast %91 : vector<1x8x512xbf16> to vector<8x512xbf16>
    %93 = arith.extf %92 : vector<8x512xbf16> to vector<8x512xf32>
    %94 = arith.truncf %85 : vector<8x128xf32> to vector<8x128xbf16>
    %cst_36 = arith.constant dense<0.000000e+00> : vector<8x512xf32>
    %95 = tpu.matmul %94, %3, %cst_36 {dimension_numbers = #tpu.dot_dimension_numbers<[1], [0], [0], [1], [0, 0, 1, 1], [], []>} : vector<8x128xbf16>, vector<128x512xbf16>, vector<8x512xf32> -> vector<8x512xf32>
    %96 = arith.addf %93, %95 : vector<8x512xf32>
    %97 = vector.extract_strided_slice %96 {offsets = [0, 0], sizes = [8, 128], strides = [1, 1]} : vector<8x512xf32> to vector<8x128xf32>
    %cst_37 = arith.constant 5.000000e-01 : f32
    %98 = vector.broadcast %cst_37 : f32 to vector<8x128xf32>
    %99 = arith.mulf %98, %97 : vector<8x128xf32>
    %100 = math.tanh %99 : vector<8x128xf32>
    %cst_38 = arith.constant 1.000000e+00 : f32
    %101 = vector.broadcast %cst_38 : f32 to vector<8x128xf32>
    %102 = arith.addf %100, %101 : vector<8x128xf32>
    %cst_39 = arith.constant 5.000000e-01 : f32
    %103 = vector.broadcast %cst_39 : f32 to vector<8x128xf32>
    %104 = arith.mulf %103, %102 : vector<8x128xf32>
    %105 = vector.extract_strided_slice %96 {offsets = [0, 128], sizes = [8, 128], strides = [1, 1]} : vector<8x512xf32> to vector<8x128xf32>
    %cst_40 = arith.constant 5.000000e-01 : f32
    %106 = vector.broadcast %cst_40 : f32 to vector<8x128xf32>
    %107 = arith.mulf %106, %105 : vector<8x128xf32>
    %108 = math.tanh %107 : vector<8x128xf32>
    %cst_41 = arith.constant 1.000000e+00 : f32
    %109 = vector.broadcast %cst_41 : f32 to vector<8x128xf32>
    %110 = arith.addf %108, %109 : vector<8x128xf32>
    %cst_42 = arith.constant 5.000000e-01 : f32
    %111 = vector.broadcast %cst_42 : f32 to vector<8x128xf32>
    %112 = arith.mulf %111, %110 : vector<8x128xf32>
    %113 = vector.extract_strided_slice %96 {offsets = [0, 256], sizes = [8, 128], strides = [1, 1]} : vector<8x512xf32> to vector<8x128xf32>
    %114 = math.tanh %113 : vector<8x128xf32>
    %115 = vector.extract_strided_slice %96 {offsets = [0, 384], sizes = [8, 128], strides = [1, 1]} : vector<8x512xf32> to vector<8x128xf32>
    %cst_43 = arith.constant 5.000000e-01 : f32
    %116 = vector.broadcast %cst_43 : f32 to vector<8x128xf32>
    %117 = arith.mulf %116, %115 : vector<8x128xf32>
    %118 = math.tanh %117 : vector<8x128xf32>
    %cst_44 = arith.constant 1.000000e+00 : f32
    %119 = vector.broadcast %cst_44 : f32 to vector<8x128xf32>
    %120 = arith.addf %118, %119 : vector<8x128xf32>
    %cst_45 = arith.constant 5.000000e-01 : f32
    %121 = vector.broadcast %cst_45 : f32 to vector<8x128xf32>
    %122 = arith.mulf %121, %120 : vector<8x128xf32>
    %123 = arith.mulf %112, %83 : vector<8x128xf32>
    %124 = arith.mulf %104, %114 : vector<8x128xf32>
    %125 = arith.addf %123, %124 : vector<8x128xf32>
    %126 = math.tanh %125 : vector<8x128xf32>
    %127 = arith.mulf %122, %126 : vector<8x128xf32>
    %128 = arith.index_cast %c2_i32 : i32 to index
    %c0_46 = arith.constant 0 : index
    %c0_47 = arith.constant 0 : index
    %129 = vector.load %arg4[%128, %c0_46, %c0_47] : memref<8x8x128xf32, #tpu.memory_space<vmem>>, vector<1x8x128xf32>
    %130 = vector.shape_cast %129 : vector<1x8x128xf32> to vector<8x128xf32>
    %131 = vector.shape_cast %127 : vector<8x128xf32> to vector<1x8x128xf32>
    tpu.vector_store %arg4[%128, %c0_46, %c0_47], %131 {strides = array<i32>} : memref<8x8x128xf32, #tpu.memory_space<vmem>>, vector<1x8x128xf32>,
    %c3_i32 = arith.constant 3 : i32
    %132 = arith.index_cast %c3_i32 : i32 to index
    %c0_48 = arith.constant 0 : index
    %c0_49 = arith.constant 0 : index
    %133 = vector.load %arg2[%132, %c0_48, %c0_49] : memref<8x8x512xbf16, #tpu.memory_space<vmem>>, vector<1x8x512xbf16>
    %134 = vector.shape_cast %133 : vector<1x8x512xbf16> to vector<8x512xbf16>
    %135 = arith.extf %134 : vector<8x512xbf16> to vector<8x512xf32>
    %136 = arith.truncf %127 : vector<8x128xf32> to vector<8x128xbf16>
    %cst_50 = arith.constant dense<0.000000e+00> : vector<8x512xf32>
    %137 = tpu.matmul %136, %3, %cst_50 {dimension_numbers = #tpu.dot_dimension_numbers<[1], [0], [0], [1], [0, 0, 1, 1], [], []>} : vector<8x128xbf16>, vector<128x512xbf16>, vector<8x512xf32> -> vector<8x512xf32>
    %138 = arith.addf %135, %137 : vector<8x512xf32>
    %139 = vector.extract_strided_slice %138 {offsets = [0, 0], sizes = [8, 128], strides = [1, 1]} : vector<8x512xf32> to vector<8x128xf32>
    %cst_51 = arith.constant 5.000000e-01 : f32
    %140 = vector.broadcast %cst_51 : f32 to vector<8x128xf32>
    %141 = arith.mulf %140, %139 : vector<8x128xf32>
    %142 = math.tanh %141 : vector<8x128xf32>
    %cst_52 = arith.constant 1.000000e+00 : f32
    %143 = vector.broadcast %cst_52 : f32 to vector<8x128xf32>
    %144 = arith.addf %142, %143 : vector<8x128xf32>
    %cst_53 = arith.constant 5.000000e-01 : f32
    %145 = vector.broadcast %cst_53 : f32 to vector<8x128xf32>
    %146 = arith.mulf %145, %144 : vector<8x128xf32>
    %147 = vector.extract_strided_slice %138 {offsets = [0, 128], sizes = [8, 128], strides = [1, 1]} : vector<8x512xf32> to vector<8x128xf32>
    %cst_54 = arith.constant 5.000000e-01 : f32
    %148 = vector.broadcast %cst_54 : f32 to vector<8x128xf32>
    %149 = arith.mulf %148, %147 : vector<8x128xf32>
    %150 = math.tanh %149 : vector<8x128xf32>
    %cst_55 = arith.constant 1.000000e+00 : f32
    %151 = vector.broadcast %cst_55 : f32 to vector<8x128xf32>
    %152 = arith.addf %150, %151 : vector<8x128xf32>
    %cst_56 = arith.constant 5.000000e-01 : f32
    %153 = vector.broadcast %cst_56 : f32 to vector<8x128xf32>
    %154 = arith.mulf %153, %152 : vector<8x128xf32>
    %155 = vector.extract_strided_slice %138 {offsets = [0, 256], sizes = [8, 128], strides = [1, 1]} : vector<8x512xf32> to vector<8x128xf32>
    %156 = math.tanh %155 : vector<8x128xf32>
    %157 = vector.extract_strided_slice %138 {offsets = [0, 384], sizes = [8, 128], strides = [1, 1]} : vector<8x512xf32> to vector<8x128xf32>
    %cst_57 = arith.constant 5.000000e-01 : f32
    %158 = vector.broadcast %cst_57 : f32 to vector<8x128xf32>
    %159 = arith.mulf %158, %157 : vector<8x128xf32>
    %160 = math.tanh %159 : vector<8x128xf32>
    %cst_58 = arith.constant 1.000000e+00 : f32
    %161 = vector.broadcast %cst_58 : f32 to vector<8x128xf32>
    %162 = arith.addf %160, %161 : vector<8x128xf32>
    %cst_59 = arith.constant 5.000000e-01 : f32
    %163 = vector.broadcast %cst_59 : f32 to vector<8x128xf32>
    %164 = arith.mulf %163, %162 : vector<8x128xf32>
    %165 = arith.mulf %154, %125 : vector<8x128xf32>
    %166 = arith.mulf %146, %156 : vector<8x128xf32>
    %167 = arith.addf %165, %166 : vector<8x128xf32>
    %168 = math.tanh %167 : vector<8x128xf32>
    %169 = arith.mulf %164, %168 : vector<8x128xf32>
    %170 = arith.index_cast %c3_i32 : i32 to index
    %c0_60 = arith.constant 0 : index
    %c0_61 = arith.constant 0 : index
    %171 = vector.load %arg4[%170, %c0_60, %c0_61] : memref<8x8x128xf32, #tpu.memory_space<vmem>>, vector<1x8x128xf32>
    %172 = vector.shape_cast %171 : vector<1x8x128xf32> to vector<8x128xf32>
    %173 = vector.shape_cast %169 : vector<8x128xf32> to vector<1x8x128xf32>
    tpu.vector_store %arg4[%170, %c0_60, %c0_61], %173 {strides = array<i32>} : memref<8x8x128xf32, #tpu.memory_space<vmem>>, vector<1x8x128xf32>,
    %c4_i32 = arith.constant 4 : i32
    %174 = arith.index_cast %c4_i32 : i32 to index
    %c0_62 = arith.constant 0 : index
    %c0_63 = arith.constant 0 : index
    %175 = vector.load %arg2[%174, %c0_62, %c0_63] : memref<8x8x512xbf16, #tpu.memory_space<vmem>>, vector<1x8x512xbf16>
    %176 = vector.shape_cast %175 : vector<1x8x512xbf16> to vector<8x512xbf16>
    %177 = arith.extf %176 : vector<8x512xbf16> to vector<8x512xf32>
    %178 = arith.truncf %169 : vector<8x128xf32> to vector<8x128xbf16>
    %cst_64 = arith.constant dense<0.000000e+00> : vector<8x512xf32>
    %179 = tpu.matmul %178, %3, %cst_64 {dimension_numbers = #tpu.dot_dimension_numbers<[1], [0], [0], [1], [0, 0, 1, 1], [], []>} : vector<8x128xbf16>, vector<128x512xbf16>, vector<8x512xf32> -> vector<8x512xf32>
    %180 = arith.addf %177, %179 : vector<8x512xf32>
    %181 = vector.extract_strided_slice %180 {offsets = [0, 0], sizes = [8, 128], strides = [1, 1]} : vector<8x512xf32> to vector<8x128xf32>
    %cst_65 = arith.constant 5.000000e-01 : f32
    %182 = vector.broadcast %cst_65 : f32 to vector<8x128xf32>
    %183 = arith.mulf %182, %181 : vector<8x128xf32>
    %184 = math.tanh %183 : vector<8x128xf32>
    %cst_66 = arith.constant 1.000000e+00 : f32
    %185 = vector.broadcast %cst_66 : f32 to vector<8x128xf32>
    %186 = arith.addf %184, %185 : vector<8x128xf32>
    %cst_67 = arith.constant 5.000000e-01 : f32
    %187 = vector.broadcast %cst_67 : f32 to vector<8x128xf32>
    %188 = arith.mulf %187, %186 : vector<8x128xf32>
    %189 = vector.extract_strided_slice %180 {offsets = [0, 128], sizes = [8, 128], strides = [1, 1]} : vector<8x512xf32> to vector<8x128xf32>
    %cst_68 = arith.constant 5.000000e-01 : f32
    %190 = vector.broadcast %cst_68 : f32 to vector<8x128xf32>
    %191 = arith.mulf %190, %189 : vector<8x128xf32>
    %192 = math.tanh %191 : vector<8x128xf32>
    %cst_69 = arith.constant 1.000000e+00 : f32
    %193 = vector.broadcast %cst_69 : f32 to vector<8x128xf32>
    %194 = arith.addf %192, %193 : vector<8x128xf32>
    %cst_70 = arith.constant 5.000000e-01 : f32
    %195 = vector.broadcast %cst_70 : f32 to vector<8x128xf32>
    %196 = arith.mulf %195, %194 : vector<8x128xf32>
    %197 = vector.extract_strided_slice %180 {offsets = [0, 256], sizes = [8, 128], strides = [1, 1]} : vector<8x512xf32> to vector<8x128xf32>
    %198 = math.tanh %197 : vector<8x128xf32>
    %199 = vector.extract_strided_slice %180 {offsets = [0, 384], sizes = [8, 128], strides = [1, 1]} : vector<8x512xf32> to vector<8x128xf32>
    %cst_71 = arith.constant 5.000000e-01 : f32
    %200 = vector.broadcast %cst_71 : f32 to vector<8x128xf32>
    %201 = arith.mulf %200, %199 : vector<8x128xf32>
    %202 = math.tanh %201 : vector<8x128xf32>
    %cst_72 = arith.constant 1.000000e+00 : f32
    %203 = vector.broadcast %cst_72 : f32 to vector<8x128xf32>
    %204 = arith.addf %202, %203 : vector<8x128xf32>
    %cst_73 = arith.constant 5.000000e-01 : f32
    %205 = vector.broadcast %cst_73 : f32 to vector<8x128xf32>
    %206 = arith.mulf %205, %204 : vector<8x128xf32>
    %207 = arith.mulf %196, %167 : vector<8x128xf32>
    %208 = arith.mulf %188, %198 : vector<8x128xf32>
    %209 = arith.addf %207, %208 : vector<8x128xf32>
    %210 = math.tanh %209 : vector<8x128xf32>
    %211 = arith.mulf %206, %210 : vector<8x128xf32>
    %212 = arith.index_cast %c4_i32 : i32 to index
    %c0_74 = arith.constant 0 : index
    %c0_75 = arith.constant 0 : index
    %213 = vector.load %arg4[%212, %c0_74, %c0_75] : memref<8x8x128xf32, #tpu.memory_space<vmem>>, vector<1x8x128xf32>
    %214 = vector.shape_cast %213 : vector<1x8x128xf32> to vector<8x128xf32>
    %215 = vector.shape_cast %211 : vector<8x128xf32> to vector<1x8x128xf32>
    tpu.vector_store %arg4[%212, %c0_74, %c0_75], %215 {strides = array<i32>} : memref<8x8x128xf32, #tpu.memory_space<vmem>>, vector<1x8x128xf32>,
    %c5_i32 = arith.constant 5 : i32
    %216 = arith.index_cast %c5_i32 : i32 to index
    %c0_76 = arith.constant 0 : index
    %c0_77 = arith.constant 0 : index
    %217 = vector.load %arg2[%216, %c0_76, %c0_77] : memref<8x8x512xbf16, #tpu.memory_space<vmem>>, vector<1x8x512xbf16>
    %218 = vector.shape_cast %217 : vector<1x8x512xbf16> to vector<8x512xbf16>
    %219 = arith.extf %218 : vector<8x512xbf16> to vector<8x512xf32>
    %220 = arith.truncf %211 : vector<8x128xf32> to vector<8x128xbf16>
    %cst_78 = arith.constant dense<0.000000e+00> : vector<8x512xf32>
    %221 = tpu.matmul %220, %3, %cst_78 {dimension_numbers = #tpu.dot_dimension_numbers<[1], [0], [0], [1], [0, 0, 1, 1], [], []>} : vector<8x128xbf16>, vector<128x512xbf16>, vector<8x512xf32> -> vector<8x512xf32>
    %222 = arith.addf %219, %221 : vector<8x512xf32>
    %223 = vector.extract_strided_slice %222 {offsets = [0, 0], sizes = [8, 128], strides = [1, 1]} : vector<8x512xf32> to vector<8x128xf32>
    %cst_79 = arith.constant 5.000000e-01 : f32
    %224 = vector.broadcast %cst_79 : f32 to vector<8x128xf32>
    %225 = arith.mulf %224, %223 : vector<8x128xf32>
    %226 = math.tanh %225 : vector<8x128xf32>
    %cst_80 = arith.constant 1.000000e+00 : f32
    %227 = vector.broadcast %cst_80 : f32 to vector<8x128xf32>
    %228 = arith.addf %226, %227 : vector<8x128xf32>
    %cst_81 = arith.constant 5.000000e-01 : f32
    %229 = vector.broadcast %cst_81 : f32 to vector<8x128xf32>
    %230 = arith.mulf %229, %228 : vector<8x128xf32>
    %231 = vector.extract_strided_slice %222 {offsets = [0, 128], sizes = [8, 128], strides = [1, 1]} : vector<8x512xf32> to vector<8x128xf32>
    %cst_82 = arith.constant 5.000000e-01 : f32
    %232 = vector.broadcast %cst_82 : f32 to vector<8x128xf32>
    %233 = arith.mulf %232, %231 : vector<8x128xf32>
    %234 = math.tanh %233 : vector<8x128xf32>
    %cst_83 = arith.constant 1.000000e+00 : f32
    %235 = vector.broadcast %cst_83 : f32 to vector<8x128xf32>
    %236 = arith.addf %234, %235 : vector<8x128xf32>
    %cst_84 = arith.constant 5.000000e-01 : f32
    %237 = vector.broadcast %cst_84 : f32 to vector<8x128xf32>
    %238 = arith.mulf %237, %236 : vector<8x128xf32>
    %239 = vector.extract_strided_slice %222 {offsets = [0, 256], sizes = [8, 128], strides = [1, 1]} : vector<8x512xf32> to vector<8x128xf32>
    %240 = math.tanh %239 : vector<8x128xf32>
    %241 = vector.extract_strided_slice %222 {offsets = [0, 384], sizes = [8, 128], strides = [1, 1]} : vector<8x512xf32> to vector<8x128xf32>
    %cst_85 = arith.constant 5.000000e-01 : f32
    %242 = vector.broadcast %cst_85 : f32 to vector<8x128xf32>
    %243 = arith.mulf %242, %241 : vector<8x128xf32>
    %244 = math.tanh %243 : vector<8x128xf32>
    %cst_86 = arith.constant 1.000000e+00 : f32
    %245 = vector.broadcast %cst_86 : f32 to vector<8x128xf32>
    %246 = arith.addf %244, %245 : vector<8x128xf32>
    %cst_87 = arith.constant 5.000000e-01 : f32
    %247 = vector.broadcast %cst_87 : f32 to vector<8x128xf32>
    %248 = arith.mulf %247, %246 : vector<8x128xf32>
    %249 = arith.mulf %238, %209 : vector<8x128xf32>
    %250 = arith.mulf %230, %240 : vector<8x128xf32>
    %251 = arith.addf %249, %250 : vector<8x128xf32>
    %252 = math.tanh %251 : vector<8x128xf32>
    %253 = arith.mulf %248, %252 : vector<8x128xf32>
    %254 = arith.index_cast %c5_i32 : i32 to index
    %c0_88 = arith.constant 0 : index
    %c0_89 = arith.constant 0 : index
    %255 = vector.load %arg4[%254, %c0_88, %c0_89] : memref<8x8x128xf32, #tpu.memory_space<vmem>>, vector<1x8x128xf32>
    %256 = vector.shape_cast %255 : vector<1x8x128xf32> to vector<8x128xf32>
    %257 = vector.shape_cast %253 : vector<8x128xf32> to vector<1x8x128xf32>
    tpu.vector_store %arg4[%254, %c0_88, %c0_89], %257 {strides = array<i32>} : memref<8x8x128xf32, #tpu.memory_space<vmem>>, vector<1x8x128xf32>,
    %c6_i32 = arith.constant 6 : i32
    %258 = arith.index_cast %c6_i32 : i32 to index
    %c0_90 = arith.constant 0 : index
    %c0_91 = arith.constant 0 : index
    %259 = vector.load %arg2[%258, %c0_90, %c0_91] : memref<8x8x512xbf16, #tpu.memory_space<vmem>>, vector<1x8x512xbf16>
    %260 = vector.shape_cast %259 : vector<1x8x512xbf16> to vector<8x512xbf16>
    %261 = arith.extf %260 : vector<8x512xbf16> to vector<8x512xf32>
    %262 = arith.truncf %253 : vector<8x128xf32> to vector<8x128xbf16>
    %cst_92 = arith.constant dense<0.000000e+00> : vector<8x512xf32>
    %263 = tpu.matmul %262, %3, %cst_92 {dimension_numbers = #tpu.dot_dimension_numbers<[1], [0], [0], [1], [0, 0, 1, 1], [], []>} : vector<8x128xbf16>, vector<128x512xbf16>, vector<8x512xf32> -> vector<8x512xf32>
    %264 = arith.addf %261, %263 : vector<8x512xf32>
    %265 = vector.extract_strided_slice %264 {offsets = [0, 0], sizes = [8, 128], strides = [1, 1]} : vector<8x512xf32> to vector<8x128xf32>
    %cst_93 = arith.constant 5.000000e-01 : f32
    %266 = vector.broadcast %cst_93 : f32 to vector<8x128xf32>
    %267 = arith.mulf %266, %265 : vector<8x128xf32>
    %268 = math.tanh %267 : vector<8x128xf32>
    %cst_94 = arith.constant 1.000000e+00 : f32
    %269 = vector.broadcast %cst_94 : f32 to vector<8x128xf32>
    %270 = arith.addf %268, %269 : vector<8x128xf32>
    %cst_95 = arith.constant 5.000000e-01 : f32
    %271 = vector.broadcast %cst_95 : f32 to vector<8x128xf32>
    %272 = arith.mulf %271, %270 : vector<8x128xf32>
    %273 = vector.extract_strided_slice %264 {offsets = [0, 128], sizes = [8, 128], strides = [1, 1]} : vector<8x512xf32> to vector<8x128xf32>
    %cst_96 = arith.constant 5.000000e-01 : f32
    %274 = vector.broadcast %cst_96 : f32 to vector<8x128xf32>
    %275 = arith.mulf %274, %273 : vector<8x128xf32>
    %276 = math.tanh %275 : vector<8x128xf32>
    %cst_97 = arith.constant 1.000000e+00 : f32
    %277 = vector.broadcast %cst_97 : f32 to vector<8x128xf32>
    %278 = arith.addf %276, %277 : vector<8x128xf32>
    %cst_98 = arith.constant 5.000000e-01 : f32
    %279 = vector.broadcast %cst_98 : f32 to vector<8x128xf32>
    %280 = arith.mulf %279, %278 : vector<8x128xf32>
    %281 = vector.extract_strided_slice %264 {offsets = [0, 256], sizes = [8, 128], strides = [1, 1]} : vector<8x512xf32> to vector<8x128xf32>
    %282 = math.tanh %281 : vector<8x128xf32>
    %283 = vector.extract_strided_slice %264 {offsets = [0, 384], sizes = [8, 128], strides = [1, 1]} : vector<8x512xf32> to vector<8x128xf32>
    %cst_99 = arith.constant 5.000000e-01 : f32
    %284 = vector.broadcast %cst_99 : f32 to vector<8x128xf32>
    %285 = arith.mulf %284, %283 : vector<8x128xf32>
    %286 = math.tanh %285 : vector<8x128xf32>
    %cst_100 = arith.constant 1.000000e+00 : f32
    %287 = vector.broadcast %cst_100 : f32 to vector<8x128xf32>
    %288 = arith.addf %286, %287 : vector<8x128xf32>
    %cst_101 = arith.constant 5.000000e-01 : f32
    %289 = vector.broadcast %cst_101 : f32 to vector<8x128xf32>
    %290 = arith.mulf %289, %288 : vector<8x128xf32>
    %291 = arith.mulf %280, %251 : vector<8x128xf32>
    %292 = arith.mulf %272, %282 : vector<8x128xf32>
    %293 = arith.addf %291, %292 : vector<8x128xf32>
    %294 = math.tanh %293 : vector<8x128xf32>
    %295 = arith.mulf %290, %294 : vector<8x128xf32>
    %296 = arith.index_cast %c6_i32 : i32 to index
    %c0_102 = arith.constant 0 : index
    %c0_103 = arith.constant 0 : index
    %297 = vector.load %arg4[%296, %c0_102, %c0_103] : memref<8x8x128xf32, #tpu.memory_space<vmem>>, vector<1x8x128xf32>
    %298 = vector.shape_cast %297 : vector<1x8x128xf32> to vector<8x128xf32>
    %299 = vector.shape_cast %295 : vector<8x128xf32> to vector<1x8x128xf32>
    tpu.vector_store %arg4[%296, %c0_102, %c0_103], %299 {strides = array<i32>} : memref<8x8x128xf32, #tpu.memory_space<vmem>>, vector<1x8x128xf32>,
    %c7_i32 = arith.constant 7 : i32
    %300 = arith.index_cast %c7_i32 : i32 to index
    %c0_104 = arith.constant 0 : index
    %c0_105 = arith.constant 0 : index
    %301 = vector.load %arg2[%300, %c0_104, %c0_105] : memref<8x8x512xbf16, #tpu.memory_space<vmem>>, vector<1x8x512xbf16>
    %302 = vector.shape_cast %301 : vector<1x8x512xbf16> to vector<8x512xbf16>
    %303 = arith.extf %302 : vector<8x512xbf16> to vector<8x512xf32>
    %304 = arith.truncf %295 : vector<8x128xf32> to vector<8x128xbf16>
    %cst_106 = arith.constant dense<0.000000e+00> : vector<8x512xf32>
    %305 = tpu.matmul %304, %3, %cst_106 {dimension_numbers = #tpu.dot_dimension_numbers<[1], [0], [0], [1], [0, 0, 1, 1], [], []>} : vector<8x128xbf16>, vector<128x512xbf16>, vector<8x512xf32> -> vector<8x512xf32>
    %306 = arith.addf %303, %305 : vector<8x512xf32>
    %307 = vector.extract_strided_slice %306 {offsets = [0, 0], sizes = [8, 128], strides = [1, 1]} : vector<8x512xf32> to vector<8x128xf32>
    %cst_107 = arith.constant 5.000000e-01 : f32
    %308 = vector.broadcast %cst_107 : f32 to vector<8x128xf32>
    %309 = arith.mulf %308, %307 : vector<8x128xf32>
    %310 = math.tanh %309 : vector<8x128xf32>
    %cst_108 = arith.constant 1.000000e+00 : f32
    %311 = vector.broadcast %cst_108 : f32 to vector<8x128xf32>
    %312 = arith.addf %310, %311 : vector<8x128xf32>
    %cst_109 = arith.constant 5.000000e-01 : f32
    %313 = vector.broadcast %cst_109 : f32 to vector<8x128xf32>
    %314 = arith.mulf %313, %312 : vector<8x128xf32>
    %315 = vector.extract_strided_slice %306 {offsets = [0, 128], sizes = [8, 128], strides = [1, 1]} : vector<8x512xf32> to vector<8x128xf32>
    %cst_110 = arith.constant 5.000000e-01 : f32
    %316 = vector.broadcast %cst_110 : f32 to vector<8x128xf32>
    %317 = arith.mulf %316, %315 : vector<8x128xf32>
    %318 = math.tanh %317 : vector<8x128xf32>
    %cst_111 = arith.constant 1.000000e+00 : f32
    %319 = vector.broadcast %cst_111 : f32 to vector<8x128xf32>
    %320 = arith.addf %318, %319 : vector<8x128xf32>
    %cst_112 = arith.constant 5.000000e-01 : f32
    %321 = vector.broadcast %cst_112 : f32 to vector<8x128xf32>
    %322 = arith.mulf %321, %320 : vector<8x128xf32>
    %323 = vector.extract_strided_slice %306 {offsets = [0, 256], sizes = [8, 128], strides = [1, 1]} : vector<8x512xf32> to vector<8x128xf32>
    %324 = math.tanh %323 : vector<8x128xf32>
    %325 = vector.extract_strided_slice %306 {offsets = [0, 384], sizes = [8, 128], strides = [1, 1]} : vector<8x512xf32> to vector<8x128xf32>
    %cst_113 = arith.constant 5.000000e-01 : f32
    %326 = vector.broadcast %cst_113 : f32 to vector<8x128xf32>
    %327 = arith.mulf %326, %325 : vector<8x128xf32>
    %328 = math.tanh %327 : vector<8x128xf32>
    %cst_114 = arith.constant 1.000000e+00 : f32
    %329 = vector.broadcast %cst_114 : f32 to vector<8x128xf32>
    %330 = arith.addf %328, %329 : vector<8x128xf32>
    %cst_115 = arith.constant 5.000000e-01 : f32
    %331 = vector.broadcast %cst_115 : f32 to vector<8x128xf32>
    %332 = arith.mulf %331, %330 : vector<8x128xf32>
    %333 = arith.mulf %322, %293 : vector<8x128xf32>
    %334 = arith.mulf %314, %324 : vector<8x128xf32>
    %335 = arith.addf %333, %334 : vector<8x128xf32>
    %336 = math.tanh %335 : vector<8x128xf32>
    %337 = arith.mulf %332, %336 : vector<8x128xf32>
    %338 = arith.index_cast %c7_i32 : i32 to index
    %c0_116 = arith.constant 0 : index
    %c0_117 = arith.constant 0 : index
    %339 = vector.load %arg4[%338, %c0_116, %c0_117] : memref<8x8x128xf32, #tpu.memory_space<vmem>>, vector<1x8x128xf32>
    %340 = vector.shape_cast %339 : vector<1x8x128xf32> to vector<8x128xf32>
    %341 = vector.shape_cast %337 : vector<8x128xf32> to vector<1x8x128xf32>
    tpu.vector_store %arg4[%338, %c0_116, %c0_117], %341 {strides = array<i32>} : memref<8x8x128xf32, #tpu.memory_space<vmem>>, vector<1x8x128xf32>,
    %c8_i32 = arith.constant 8 : i32
    %c0_118 = arith.constant 0 : index
    %c0_119 = arith.constant 0 : index
    %342 = vector.load %arg5[%c0_118, %c0_119] : memref<8x128xf32, #tpu.memory_space<vmem>>, vector<8x128xf32>
    tpu.vector_store %arg5[%c0_118, %c0_119], %337 {strides = array<i32>} : memref<8x128xf32, #tpu.memory_space<vmem>>, vector<8x128xf32>,
    %c0_120 = arith.constant 0 : index
    %c0_121 = arith.constant 0 : index
    %343 = vector.load %arg6[%c0_120, %c0_121] : memref<8x128xf32, #tpu.memory_space<vmem>>, vector<8x128xf32>
    tpu.vector_store %arg6[%c0_120, %c0_121], %335 {strides = array<i32>} : memref<8x128xf32, #tpu.memory_space<vmem>>, vector<8x128xf32>,
    return
  }
  func.func @transform_0(%arg0: i32, %arg1: i32) -> (i32, i32, i32) {
    %c0_i32 = arith.constant 0 : i32
    %c0_i32_0 = arith.constant 0 : i32
    return %arg1, %arg0, %c0_i32 : i32, i32, i32
  }
  func.func @transform_2(%arg0: i32, %arg1: i32) -> (i32, i32, i32) {
    %c0_i32 = arith.constant 0 : i32
    %c0_i32_0 = arith.constant 0 : i32
    return %arg1, %arg0, %c0_i32 : i32, i32, i32
  }
}

</mosaic_0001>

<bundles_post_ra>
// kernel: lstm_forward.1
= control target key start
LH: loop header
LB: loop body
LE: loop exit
PB: predicated region body
PF: predicated region fallthrough
CT: control target
= control target key end

     0   :  { %s2020_s0 = inlined_call_operand.vmem [shape: bf16[8,8,512], index: 0, kind: input, shape index: {}]   ;;  %s2021_s1 = inlined_call_operand.vmem [shape: bf16[128,512], index: 1, kind: input, shape index: {}]   ;;  %s2022_s2 = inlined_call_operand.vmem [shape: f32[8,8,128], index: 2, kind: output, shape index: {}]  }
   0x1   :  { %v33_v0 = vld [vmem:[%s2021_s1] sm:$0xf]  ;;  %v35_v1 = vld [vmem:[%s2021_s1 + $0x10] sm:$0xf]  ;;  %v37_v2 = vld [vmem:[%s2021_s1 + $0x4] sm:$0xf] }
   0x2   :  { %34 = vst [vmem:[#allocation4] sm:$0xf] %v33_v0  ;;  %36 = vst [vmem:[#allocation4 + $0x4] sm:$0xf] %v35_v1  ;;  %v39_v3 = vld [vmem:[%s2021_s1 + $0x14] sm:$0xf] }
   0x3   :  { %38 = vst [vmem:[#allocation4 + $0x8] sm:$0xf] %v37_v2  ;;  %v41_v4 = vld [vmem:[%s2021_s1 + $0x8] sm:$0xf]  ;;  %v43_v5 = vld [vmem:[%s2021_s1 + $0x18] sm:$0xf] }
   0x4   :  { %40 = vst [vmem:[#allocation4 + $0xc] sm:$0xf] %v39_v3  ;;  %42 = vst [vmem:[#allocation4 + $0x10] sm:$0xf] %v41_v4  ;;  %v45_v6 = vld [vmem:[%s2021_s1 + $0xc] sm:$0xf] }
   0x5   :  { %44 = vst [vmem:[#allocation4 + $0x14] sm:$0xf] %v43_v5  ;;  %v47_v7 = vld [vmem:[%s2021_s1 + $0x1c] sm:$0xff]   ;;  %v51_v8 = vld [vmem:[%s2021_s1 + $0x30] sm:$0xf] }
   0x6   :  { %46 = vst [vmem:[#allocation4 + $0x18] sm:$0xf] %v45_v6  ;;  %48 = vst [vmem:[#allocation4 + $0x1c] sm:$0xff] %v47_v7   ;;  %v53_v9 = vld [vmem:[%s2021_s1 + $0x24] sm:$0xf]  ;;  %v63_v14 = vld [vmem:[%s2021_s1 + $0x3c] sm:$0xff]  }
   0x7   :  { %52 = vst [vmem:[#allocation4 + $0x24] sm:$0xf] %v51_v8  ;;  %v55_v10 = vld [vmem:[%s2021_s1 + $0x34] sm:$0xf]  ;;  %v57_v11 = vld [vmem:[%s2021_s1 + $0x28] sm:$0xf] }
   0x8   :  { %54 = vst [vmem:[#allocation4 + $0x28] sm:$0xf] %v53_v9  ;;  %56 = vst [vmem:[#allocation4 + $0x2c] sm:$0xf] %v55_v10  ;;  %v59_v12 = vld [vmem:[%s2021_s1 + $0x38] sm:$0xf] }
   0x9   :  { %58 = vst [vmem:[#allocation4 + $0x30] sm:$0xf] %v57_v11  ;;  %v61_v13 = vld [vmem:[%s2021_s1 + $0x2c] sm:$0xf]  ;;  %60 = vst [vmem:[#allocation4 + $0x34] sm:$0xf] %v59_v12 }
   0xa   :  { %62 = vst [vmem:[#allocation4 + $0x38] sm:$0xf] %v61_v13  ;;  %64 = vst [vmem:[#allocation4 + $0x3c] sm:$0xff] %v63_v14   ;;  %v67_v15 = vld [vmem:[%s2021_s1 + $0x50] sm:$0xf]  ;;  %v79_v21 = vld [vmem:[%s2021_s1 + $0x5c] sm:$0xff]  }
   0xb   :  { %v69_v16 = vld [vmem:[%s2021_s1 + $0x44] sm:$0xf]  ;;  %v71_v17 = vld [vmem:[%s2021_s1 + $0x54] sm:$0xf]  ;;  %68 = vst [vmem:[#allocation4 + $0x44] sm:$0xf] %v67_v15 }
   0xc   :  { %70 = vst [vmem:[#allocation4 + $0x48] sm:$0xf] %v69_v16  ;;  %72 = vst [vmem:[#allocation4 + $0x4c] sm:$0xf] %v71_v17  ;;  %v73_v18 = vld [vmem:[%s2021_s1 + $0x48] sm:$0xf] }
   0xd   :  { %v75_v19 = vld [vmem:[%s2021_s1 + $0x58] sm:$0xf]  ;;  %v77_v20 = vld [vmem:[%s2021_s1 + $0x4c] sm:$0xf]  ;;  %74 = vst [vmem:[#allocation4 + $0x50] sm:$0xf] %v73_v18 }
   0xe   :  { %76 = vst [vmem:[#allocation4 + $0x54] sm:$0xf] %v75_v19  ;;  %78 = vst [vmem:[#allocation4 + $0x58] sm:$0xf] %v77_v20  ;;  %v83_v22 = vld [vmem:[%s2021_s1 + $0x70] sm:$0xf] }
   0xf   :  { %v85_v23 = vld [vmem:[%s2021_s1 + $0x64] sm:$0xf]  ;;  %80 = vst [vmem:[#allocation4 + $0x5c] sm:$0xff] %v79_v21   ;;  %84 = vst [vmem:[#allocation4 + $0x64] sm:$0xf] %v83_v22  ;;  %v95_v28 = vld [vmem:[%s2021_s1 + $0x7c] sm:$0xff]  }
  0x10   :  { %86 = vst [vmem:[#allocation4 + $0x68] sm:$0xf] %v85_v23  ;;  %v87_v24 = vld [vmem:[%s2021_s1 + $0x74] sm:$0xf]  ;;  %v89_v25 = vld [vmem:[%s2021_s1 + $0x68] sm:$0xf] }
  0x11   :  { %v91_v26 = vld [vmem:[%s2021_s1 + $0x78] sm:$0xf]  ;;  %88 = vst [vmem:[#allocation4 + $0x6c] sm:$0xf] %v87_v24  ;;  %90 = vst [vmem:[#allocation4 + $0x70] sm:$0xf] %v89_v25 }
  0x12   :  { %92 = vst [vmem:[#allocation4 + $0x74] sm:$0xf] %v91_v26  ;;  %v93_v27 = vld [vmem:[%s2021_s1 + $0x6c] sm:$0xf]  ;;  %v99_v29 = vld [vmem:[%s2021_s1 + $0x90] sm:$0xf] }
  0x13   :  { %94 = vst [vmem:[#allocation4 + $0x78] sm:$0xf] %v93_v27  ;;  %96 = vst [vmem:[#allocation4 + $0x7c] sm:$0xff] %v95_v28   ;;  %v101_v30 = vld [vmem:[%s2021_s1 + $0x84] sm:$0xf]  ;;  %v111_v35 = vld [vmem:[%s2021_s1 + $0x9c] sm:$0xff]  }
  0x14   :  { %100 = vst [vmem:[#allocation4 + $0x84] sm:$0xf] %v99_v29  ;;  %v103_v31 = vld [vmem:[%s2021_s1 + $0x94] sm:$0xf]  ;;  %v105_v32 = vld [vmem:[%s2021_s1 + $0x88] sm:$0xf] }
  0x15   :  { %102 = vst [vmem:[#allocation4 + $0x88] sm:$0xf] %v101_v30  ;;  %104 = vst [vmem:[#allocation4 + $0x8c] sm:$0xf] %v103_v31  ;;  %v107_v33 = vld [vmem:[%s2021_s1 + $0x98] sm:$0xf] }
  0x16   :  { %106 = vst [vmem:[#allocation4 + $0x90] sm:$0xf] %v105_v32  ;;  %v109_v34 = vld [vmem:[%s2021_s1 + $0x8c] sm:$0xf]  ;;  %108 = vst [vmem:[#allocation4 + $0x94] sm:$0xf] %v107_v33 }
  0x17   :  { %110 = vst [vmem:[#allocation4 + $0x98] sm:$0xf] %v109_v34  ;;  %112 = vst [vmem:[#allocation4 + $0x9c] sm:$0xff] %v111_v35   ;;  %v115_v36 = vld [vmem:[%s2021_s1 + $0xb0] sm:$0xf]  ;;  %v127_v42 = vld [vmem:[%s2021_s1 + $0xbc] sm:$0xff]  }
  0x18   :  { %v117_v37 = vld [vmem:[%s2021_s1 + $0xa4] sm:$0xf]  ;;  %v119_v38 = vld [vmem:[%s2021_s1 + $0xb4] sm:$0xf]  ;;  %116 = vst [vmem:[#allocation4 + $0xa4] sm:$0xf] %v115_v36 }
  0x19   :  { %118 = vst [vmem:[#allocation4 + $0xa8] sm:$0xf] %v117_v37  ;;  %120 = vst [vmem:[#allocation4 + $0xac] sm:$0xf] %v119_v38  ;;  %v121_v39 = vld [vmem:[%s2021_s1 + $0xa8] sm:$0xf] }
  0x1a   :  { %v123_v40 = vld [vmem:[%s2021_s1 + $0xb8] sm:$0xf]  ;;  %v125_v41 = vld [vmem:[%s2021_s1 + $0xac] sm:$0xf]  ;;  %122 = vst [vmem:[#allocation4 + $0xb0] sm:$0xf] %v121_v39 }
  0x1b   :  { %124 = vst [vmem:[#allocation4 + $0xb4] sm:$0xf] %v123_v40  ;;  %126 = vst [vmem:[#allocation4 + $0xb8] sm:$0xf] %v125_v41  ;;  %v131_v43 = vld [vmem:[%s2021_s1 + $0xd0] sm:$0xf] }
  0x1c   :  { %v133_v44 = vld [vmem:[%s2021_s1 + $0xc4] sm:$0xf]  ;;  %128 = vst [vmem:[#allocation4 + $0xbc] sm:$0xff] %v127_v42   ;;  %132 = vst [vmem:[#allocation4 + $0xc4] sm:$0xf] %v131_v43  ;;  %v143_v49 = vld [vmem:[%s2021_s1 + $0xdc] sm:$0xff]  }
  0x1d   :  { %134 = vst [vmem:[#allocation4 + $0xc8] sm:$0xf] %v133_v44  ;;  %v135_v45 = vld [vmem:[%s2021_s1 + $0xd4] sm:$0xf]  ;;  %v137_v46 = vld [vmem:[%s2021_s1 + $0xc8] sm:$0xf] }
  0x1e   :  { %v139_v47 = vld [vmem:[%s2021_s1 + $0xd8] sm:$0xf]  ;;  %136 = vst [vmem:[#allocation4 + $0xcc] sm:$0xf] %v135_v45  ;;  %138 = vst [vmem:[#allocation4 + $0xd0] sm:$0xf] %v137_v46 }
  0x1f   :  { %140 = vst [vmem:[#allocation4 + $0xd4] sm:$0xf] %v139_v47  ;;  %v141_v48 = vld [vmem:[%s2021_s1 + $0xcc] sm:$0xf]  ;;  %v147_v50 = vld [vmem:[%s2021_s1 + $0xf0] sm:$0xf] }
  0x20   :  { %142 = vst [vmem:[#allocation4 + $0xd8] sm:$0xf] %v141_v48  ;;  %144 = vst [vmem:[#allocation4 + $0xdc] sm:$0xff] %v143_v49   ;;  %v149_v51 = vld [vmem:[%s2021_s1 + $0xe4] sm:$0xf] }
  0x21   :  { %148 = vst [vmem:[#allocation4 + $0xe4] sm:$0xf] %v147_v50  ;;  %v151_v52 = vld [vmem:[%s2021_s1 + $0xf4] sm:$0xf]  ;;  %v153_v53 = vld [vmem:[%s2021_s1 + $0xe8] sm:$0xf] }
  0x22   :  { %150 = vst [vmem:[#allocation4 + $0xe8] sm:$0xf] %v149_v51  ;;  %152 = vst [vmem:[#allocation4 + $0xec] sm:$0xf] %v151_v52  ;;  %v155_v54 = vld [vmem:[%s2021_s1 + $0xf8] sm:$0xf] }
  0x23   :  { %154 = vst [vmem:[#allocation4 + $0xf0] sm:$0xf] %v153_v53  ;;  %v157_v55 = vld [vmem:[%s2021_s1 + $0xec] sm:$0xf]  ;;  %v159_v56 = vld [vmem:[%s2021_s1 + $0xfc] sm:$0xf] }
  0x24   :  { %156 = vst [vmem:[#allocation4 + $0xf4] sm:$0xf] %v155_v54  ;;  %158 = vst [vmem:[#allocation4 + $0xf8] sm:$0xf] %v157_v55 }
  0x25   :  { %160 = vst [vmem:[#allocation4 + $0xfc] sm:$0xf] %v159_v56 }
  0x26   :  { %319 = vsyncadd [#allocation5], 4096 }
  0x27   :  { %1428 = dma.done.wait [#allocation5], 4096 }
  0x28   :  { %1429 = vsyncadd [#allocation5], 4294963200  ;;  %v1430_v57 = vmov 0   ;;  %v1620_v58 = vld [vmem:[#allocation4 + $0x8] sm:$0xff]  ;;  %v1622_v59 = vld [vmem:[#allocation4] sm:$0xff]  ;;  %v1431_v26 = vmov 0.0|0.0  }
  0x29   :  { %397 = vmatprep.mubr.bf16.mxu0 %v1430_v57  ;;  %438 = vmatprep.mubr.bf16.mxu1 %v1430_v57  ;;  %v1624_v60 = vld [vmem:[#allocation4 + $0x28] sm:$0xff]  ;;  %v1627_v61 = vld [vmem:[#allocation4 + $0x18] sm:$0xff]  ;;  %v1629_v62 = vld [vmem:[#allocation4 + $0x10] sm:$0xff] }
  0x2a   :  { %365 = vmatprep.subr.bf16.mxu0 %v1620_v58  ;;  %406 = vmatprep.subr.bf16.mxu1 %v1627_v61  ;;  %v1633_v63 = vld [vmem:[#allocation4 + $0x38] sm:$0xff]  ;;  %v1636_v0 = vld [vmem:[#allocation4 + $0x20] sm:$0xff]  ;;  %v1639_v1 = vld [vmem:[#allocation4 + $0x48] sm:$0xff] }
  0x2b   :  { %366 = vmatpush1.bf16.msra.mxu0 %v1622_v59  ;;  %407 = vmatpush1.bf16.msra.mxu1 %v1629_v62  ;;  %v1642_v2 = vld [vmem:[#allocation4 + $0x30] sm:$0xff]  ;;  %v1644_v3 = vld [vmem:[#allocation4 + $0x58] sm:$0xff]  ;;  %v1648_v4 = vld [vmem:[#allocation4 + $0x40] sm:$0xff] }
  0x2c   :  { %367 = vmatprep.subr.bf16.mxu0 %v1624_v60  ;;  %408 = vmatprep.subr.bf16.mxu1 %v1633_v63  ;;  %v1651_v5 = vld [vmem:[#allocation4 + $0x68] sm:$0xff]  ;;  %v1654_v6 = vld [vmem:[#allocation4 + $0x50] sm:$0xff]  ;;  %v1656_v7 = vld [vmem:[#allocation4 + $0x78] sm:$0xff] }
  0x2d   :  { %v1660_v8 = vld [vmem:[#allocation4 + $0x60] sm:$0xff]  ;;  %v1663_v9 = vld [vmem:[#allocation4 + $0x88] sm:$0xff]  ;;  %v1666_v10 = vld [vmem:[#allocation4 + $0x70] sm:$0xff] }
  0x2e   :  { %v1668_v11 = vld [vmem:[#allocation4 + $0x98] sm:$0xff]  ;;  %v1672_v12 = vld [vmem:[#allocation4 + $0x80] sm:$0xff]  ;;  %v1675_v13 = vld [vmem:[#allocation4 + $0xa8] sm:$0xff] }
  0x2f   :  { %368 = vmatpush1.bf16.msra.mxu0 %v1636_v0  ;;  %409 = vmatpush1.bf16.msra.mxu1 %v1642_v2  ;;  %v1678_v14 = vld [vmem:[#allocation4 + $0x90] sm:$0xff]  ;;  %v1680_v15 = vld [vmem:[#allocation4 + $0xb8] sm:$0xff]  ;;  %v1684_v16 = vld [vmem:[#allocation4 + $0xa0] sm:$0xff] }
  0x30   :  { %369 = vmatprep.subr.bf16.mxu0 %v1639_v1  ;;  %410 = vmatprep.subr.bf16.mxu1 %v1644_v3  ;;  %v1687_v17 = vld [vmem:[#allocation4 + $0xc8] sm:$0xff]  ;;  %v1690_v18 = vld [vmem:[#allocation4 + $0xb0] sm:$0xff]  ;;  %v1692_v19 = vld [vmem:[#allocation4 + $0xd8] sm:$0xff] }
  0x31   :  { %v1696_v20 = vld [vmem:[#allocation4 + $0xc0] sm:$0xff]  ;;  %v1699_v21 = vld [vmem:[#allocation4 + $0xe8] sm:$0xff]  ;;  %v1702_v22 = vld [vmem:[#allocation4 + $0xd0] sm:$0xff] }
  0x32   :  { %v1704_v23 = vld [vmem:[#allocation4 + $0xf8] sm:$0xff]  ;;  %v1708_v24 = vld [vmem:[#allocation4 + $0xe0] sm:$0xff]  ;;  %v1712_v25 = vld [vmem:[#allocation4 + $0xf0] sm:$0xff] }
  0x33   :  { %370 = vmatpush1.bf16.msra.mxu0 %v1648_v4  ;;  %411 = vmatpush1.bf16.msra.mxu1 %v1654_v6  ;;  %v358_v27 = vld [vmem:[%s2020_s0] sm:$0xff]  ;;  %v359_v28 = vld [vmem:[%s2020_s0 + $0x8] sm:$0xff] }
  0x34   :  { %371 = vmatprep.subr.bf16.mxu0 %v1651_v5  ;;  %412 = vmatprep.subr.bf16.mxu1 %v1656_v7  ;;  %v360_v29 = vunpack.c.l.bf16 %v358_v27  ;;  %v361_v30 = vunpack.c.h.bf16 %v358_v27  ;;  %v362_v31 = vunpack.c.l.bf16 %v359_v28  ;;  %v363_v45 = vunpack.c.h.bf16 %v359_v28 }
  0x37   :  { %372 = vmatpush1.bf16.msra.mxu0 %v1660_v8  ;;  %413 = vmatpush1.bf16.msra.mxu1 %v1666_v10 }
  0x38   :  { %373 = vmatprep.subr.bf16.mxu0 %v1663_v9  ;;  %414 = vmatprep.subr.bf16.mxu1 %v1668_v11 }
  0x3b   :  { %374 = vmatpush1.bf16.msra.mxu0 %v1672_v12  ;;  %415 = vmatpush1.bf16.msra.mxu1 %v1678_v14 }
  0x3c   :  { %375 = vmatprep.subr.bf16.mxu0 %v1675_v13  ;;  %416 = vmatprep.subr.bf16.mxu1 %v1680_v15 }
  0x3f   :  { %376 = vmatpush1.bf16.msra.mxu0 %v1684_v16  ;;  %417 = vmatpush1.bf16.msra.mxu1 %v1690_v18 }
  0x40   :  { %377 = vmatprep.subr.bf16.mxu0 %v1687_v17  ;;  %418 = vmatprep.subr.bf16.mxu1 %v1692_v19 }
  0x43   :  { %378 = vmatpush1.bf16.msra.mxu0 %v1696_v20  ;;  %419 = vmatpush1.bf16.msra.mxu1 %v1702_v22 }
  0x44   :  { %379 = vmatprep.subr.bf16.mxu0 %v1699_v21  ;;  %420 = vmatprep.subr.bf16.mxu1 %v1704_v23 }
  0x47   :  { %380 = vmatpush1.bf16.msra.mxu0 %v1708_v24  ;;  %421 = vmatpush1.bf16.msra.mxu1 %v1712_v25 }
  0x48   :  { %478 = vmatprep.subr.bf16.mxu0 %v1620_v58  ;;  %519 = vmatprep.subr.bf16.mxu1 %v1627_v61 }
  0x4a   :  { %398 = vmatmul.mubr.bf16.vlgmr.msra.gmra.mrb[0].mxu0 %v1431_v26  ;;  %439 = vmatmul.mubr.bf16.vlgmr.msra.gmra.mrb[0].mxu1 %v1431_v26 }
  0x4b   :  { %479 = vmatpush1.bf16.msra.mxu0 %v1622_v59  ;;  %520 = vmatpush1.bf16.msra.mxu1 %v1629_v62 }
  0x4c   :  { %480 = vmatprep.subr.bf16.mxu0 %v1624_v60  ;;  %521 = vmatprep.subr.bf16.mxu1 %v1633_v63 }
  0x4d   :  { %510 = vmatprep.mubr.bf16.mxu0 %v1430_v57  ;;  %551 = vmatprep.mubr.bf16.mxu1 %v1430_v57 }
  0x4f   :  { %481 = vmatpush1.bf16.msra.mxu0 %v1636_v0  ;;  %522 = vmatpush1.bf16.msra.mxu1 %v1642_v2 }
  0x50   :  { %482 = vmatprep.subr.bf16.mxu0 %v1639_v1  ;;  %523 = vmatprep.subr.bf16.mxu1 %v1644_v3 }
  0x53   :  { %483 = vmatpush1.bf16.msra.mxu0 %v1648_v4  ;;  %524 = vmatpush1.bf16.msra.mxu1 %v1654_v6 }
  0x54   :  { %484 = vmatprep.subr.bf16.mxu0 %v1651_v5  ;;  %525 = vmatprep.subr.bf16.mxu1 %v1656_v7 }
  0x57   :  { %485 = vmatpush1.bf16.msra.mxu0 %v1660_v8  ;;  %526 = vmatpush1.bf16.msra.mxu1 %v1666_v10 }
  0x58   :  { %486 = vmatprep.subr.bf16.mxu0 %v1663_v9  ;;  %527 = vmatprep.subr.bf16.mxu1 %v1668_v11 }
  0x5b   :  { %487 = vmatpush1.bf16.msra.mxu0 %v1672_v12  ;;  %528 = vmatpush1.bf16.msra.mxu1 %v1678_v14 }
  0x5c   :  { %488 = vmatprep.subr.bf16.mxu0 %v1675_v13  ;;  %529 = vmatprep.subr.bf16.mxu1 %v1680_v15 }
  0x5f   :  { %489 = vmatpush1.bf16.msra.mxu0 %v1684_v16  ;;  %530 = vmatpush1.bf16.msra.mxu1 %v1690_v18 }
  0x60   :  { %490 = vmatprep.subr.bf16.mxu0 %v1687_v17  ;;  %531 = vmatprep.subr.bf16.mxu1 %v1692_v19 }
  0x63   :  { %491 = vmatpush1.bf16.msra.mxu0 %v1696_v20  ;;  %532 = vmatpush1.bf16.msra.mxu1 %v1702_v22 }
  0x64   :  { %492 = vmatprep.subr.bf16.mxu0 %v1699_v21  ;;  %533 = vmatprep.subr.bf16.mxu1 %v1704_v23 }
  0x67   :  { %493 = vmatpush1.bf16.msra.mxu0 %v1708_v24  ;;  %534 = vmatpush1.bf16.msra.mxu1 %v1712_v25 }
  0x68   :  { %592 = vmatprep.subr.bf16.mxu0 %v1620_v58  ;;  %633 = vmatprep.subr.bf16.mxu1 %v1627_v61 }
 0x11d   :  { %v399_v32 = vpop.f32.mrb[0].mxu0  ;;  %v440_v35 = vpop.f32.mrb[0].mxu1 }
 0x11e   :  { %v447_v33 = vadd.f32 %v399_v32, %v360_v29  ;;  %v401_v34 = vpop.f32.mrb[1].mxu0  ;;  %v442_v38 = vpop.f32.mrb[1].mxu1  ;;  %v449_v41 = vadd.f32 %v440_v35, %v362_v31  ;;  %v1295_v35 = vld [vmem:[%s2020_s0 + $0x18] sm:$0xff] }
 0x11f   :  { %v448_v36 = vadd.f32 %v401_v34, %v361_v30  ;;  %v403_v37 = vpop.f32.mrb[2].mxu0  ;;  %v444_v42 = vpop.f32.mrb[2].mxu1  ;;  %v450_v46 = vadd.f32 %v442_v38, %v363_v45 }
 0x120   :  { %v451_v39 = vmul.f32 0.5, %v447_v33  ;;  %v404_v40 = vpop.f32.mrb[3].mxu0  ;;  %v445_v44 = vpop.f32.mrb[3].mxu1  ;;  %v1294_v33 = vld [vmem:[%s2020_s0 + $0x10] sm:$0xff] }
 0x121   :  { %v455_v43 = vmul.f32 0.5, %v448_v36  ;;  %v460_v47 = vmul.f32 0.5, %v450_v46  ;;  %v473_v34 = vunpack.c.l.bf16 %v1294_v33  ;;  %v474_v36 = vunpack.c.h.bf16 %v1294_v33 }
 0x122   :  { %1318 = vtanh.f32 %v451_v39  ;;  %v475_v40 = vunpack.c.l.bf16 %v1295_v35 }
 0x123   :  { %1320 = vtanh.f32 %v455_v43 }
 0x124   :  { %1322 = vtanh.f32 %v449_v41 }
 0x125   :  { %1324 = vtanh.f32 %v460_v47 }
 0x12c   :  { %v1319_v48 = vpop.eup %1318 }
 0x12d   :  { %v1321_v49 = vpop.eup %1320  ;;  %v453_v50 = vadd.f32 1.0, %v1319_v48 }
 0x12e   :  { %v1323_v51 = vpop.eup %1322  ;;  %v457_v52 = vadd.f32 1.0, %v1321_v49 }
 0x12f   :  { %v454_v53 = vmul.f32 0.5, %v453_v50  ;;  %v1325_v27 = vpop.eup %1324 }
 0x130   :  { %v458_v54 = vmul.f32 0.5, %v457_v52  ;;  %v462_v28 = vadd.f32 1.0, %v1325_v27 }
 0x131   :  { %v465_v55 = vmul.f32 %v1323_v51, %v454_v53  ;;  %v476_v51 = vunpack.c.h.bf16 %v1295_v35 }
 0x132   :  { %v464_v56 = vmul.f32 0.0, %v458_v54  ;;  %v463_v29 = vmul.f32 0.5, %v462_v28 }
 0x134   :  { %v1758_v26 = vadd.f32 %v465_v55, %v464_v56 }
 0x136   :  { %1326 = vtanh.f32 %v1758_v26 }
 0x140   :  { %v1327_v30 = vpop.eup %1326 }
 0x141   :  { %v468_v31 = vmul.f32 %v1327_v30, %v463_v29 }
 0x143   :  { %469 = vst [vmem:[%s2022_s2] sm:$0xff] %v468_v31  ;;  %v477_v32 = vpack.c.bf16 %v468_v31, %v468_v31 }
 0x145   :  { %511 = vmatmul.mubr.bf16.vlgmr.msra.gmra.mrb[4].mxu0 %v477_v32  ;;  %552 = vmatmul.mubr.bf16.vlgmr.msra.gmra.mrb[4].mxu1 %v477_v32 }
 0x146   :  { %593 = vmatpush1.bf16.msra.mxu0 %v1622_v59  ;;  %634 = vmatpush1.bf16.msra.mxu1 %v1629_v62 }
 0x147   :  { %594 = vmatprep.subr.bf16.mxu0 %v1624_v60  ;;  %635 = vmatprep.subr.bf16.mxu1 %v1633_v63 }
 0x148   :  { %624 = vmatprep.mubr.bf16.mxu0 %v1430_v57  ;;  %665 = vmatprep.mubr.bf16.mxu1 %v1430_v57 }
 0x14a   :  { %595 = vmatpush1.bf16.msra.mxu0 %v1636_v0  ;;  %636 = vmatpush1.bf16.msra.mxu1 %v1642_v2 }
 0x14b   :  { %596 = vmatprep.subr.bf16.mxu0 %v1639_v1  ;;  %637 = vmatprep.subr.bf16.mxu1 %v1644_v3 }
 0x14e   :  { %597 = vmatpush1.bf16.msra.mxu0 %v1648_v4  ;;  %638 = vmatpush1.bf16.msra.mxu1 %v1654_v6 }
 0x14f   :  { %598 = vmatprep.subr.bf16.mxu0 %v1651_v5  ;;  %639 = vmatprep.subr.bf16.mxu1 %v1656_v7 }
 0x152   :  { %599 = vmatpush1.bf16.msra.mxu0 %v1660_v8  ;;  %640 = vmatpush1.bf16.msra.mxu1 %v1666_v10 }
 0x153   :  { %600 = vmatprep.subr.bf16.mxu0 %v1663_v9  ;;  %641 = vmatprep.subr.bf16.mxu1 %v1668_v11 }
 0x156   :  { %601 = vmatpush1.bf16.msra.mxu0 %v1672_v12  ;;  %642 = vmatpush1.bf16.msra.mxu1 %v1678_v14 }
 0x157   :  { %602 = vmatprep.subr.bf16.mxu0 %v1675_v13  ;;  %643 = vmatprep.subr.bf16.mxu1 %v1680_v15 }
 0x15a   :  { %603 = vmatpush1.bf16.msra.mxu0 %v1684_v16  ;;  %644 = vmatpush1.bf16.msra.mxu1 %v1690_v18 }
 0x15b   :  { %604 = vmatprep.subr.bf16.mxu0 %v1687_v17  ;;  %645 = vmatprep.subr.bf16.mxu1 %v1692_v19 }
 0x15e   :  { %605 = vmatpush1.bf16.msra.mxu0 %v1696_v20  ;;  %646 = vmatpush1.bf16.msra.mxu1 %v1702_v22 }
 0x15f   :  { %606 = vmatprep.subr.bf16.mxu0 %v1699_v21  ;;  %647 = vmatprep.subr.bf16.mxu1 %v1704_v23 }
 0x162   :  { %607 = vmatpush1.bf16.msra.mxu0 %v1708_v24  ;;  %648 = vmatpush1.bf16.msra.mxu1 %v1712_v25 }
 0x163   :  { %706 = vmatprep.subr.bf16.mxu0 %v1620_v58  ;;  %747 = vmatprep.subr.bf16.mxu1 %v1627_v61 }
 0x218   :  { %v512_v37 = vpop.f32.mrb[4].mxu0  ;;  %v553_v38 = vpop.f32.mrb[4].mxu1 }
 0x219   :  { %v560_v39 = vadd.f32 %v512_v37, %v473_v34  ;;  %v514_v41 = vpop.f32.mrb[5].mxu0  ;;  %v555_v42 = vpop.f32.mrb[5].mxu1  ;;  %v562_v50 = vadd.f32 %v553_v38, %v475_v40 }
 0x21a   :  { %v561_v43 = vadd.f32 %v514_v41, %v474_v36  ;;  %v516_v44 = vpop.f32.mrb[6].mxu0  ;;  %v557_v45 = vpop.f32.mrb[6].mxu1  ;;  %v563_v52 = vadd.f32 %v555_v42, %v476_v51  ;;  %v1298_v41 = vld [vmem:[%s2020_s0 + $0x28] sm:$0xff] }
 0x21b   :  { %v564_v46 = vmul.f32 0.5, %v560_v39  ;;  %v517_v47 = vpop.f32.mrb[7].mxu0  ;;  %v558_v48 = vpop.f32.mrb[7].mxu1 }
 0x21c   :  { %v568_v49 = vmul.f32 0.5, %v561_v43  ;;  %v573_v53 = vmul.f32 0.5, %v563_v52 }
 0x21d   :  { %1328 = vtanh.f32 %v564_v46  ;;  %v589_v46 = vunpack.c.l.bf16 %v1298_v41 }
 0x21e   :  { %1330 = vtanh.f32 %v568_v49 }
 0x21f   :  { %1332 = vtanh.f32 %v562_v50 }
 0x220   :  { %1334 = vtanh.f32 %v573_v53 }
 0x227   :  { %v1329_v54 = vpop.eup %1328 }
 0x228   :  { %v1331_v55 = vpop.eup %1330  ;;  %v566_v56 = vadd.f32 1.0, %v1329_v54 }
 0x229   :  { %v570_v27 = vadd.f32 1.0, %v1331_v55  ;;  %v1333_v29 = vpop.eup %1332 }
 0x22a   :  { %v567_v28 = vmul.f32 0.5, %v566_v56  ;;  %v1335_v34 = vpop.eup %1334 }
 0x22b   :  { %v571_v30 = vmul.f32 0.5, %v570_v27  ;;  %v575_v35 = vadd.f32 1.0, %v1335_v34  ;;  %v590_v27 = vunpack.c.h.bf16 %v1298_v41 }
 0x22c   :  { %v578_v31 = vmul.f32 %v1333_v29, %v567_v28 }
 0x22d   :  { %v577_v32 = vmul.f32 %v571_v30, %v1758_v26  ;;  %v576_v36 = vmul.f32 0.5, %v575_v35  ;;  %v1297_v26 = vld [vmem:[%s2020_s0 + $0x20] sm:$0xff] }
 0x22e   :  { %v587_v40 = vunpack.c.l.bf16 %v1297_v26  ;;  %v588_v42 = vunpack.c.h.bf16 %v1297_v26 }
 0x22f   :  { %v1805_v33 = vadd.f32 %v578_v31, %v577_v32 }
 0x231   :  { %1336 = vtanh.f32 %v1805_v33 }
 0x23b   :  { %v1337_v37 = vpop.eup %1336 }
 0x23c   :  { %v581_v38 = vmul.f32 %v1337_v37, %v576_v36 }
 0x23e   :  { %1296 = vst [vmem:[%s2022_s2 + $0x8] sm:$0xff] %v581_v38  ;;  %v591_v39 = vpack.c.bf16 %v581_v38, %v581_v38 }
 0x240   :  { %625 = vmatmul.mubr.bf16.vlgmr.msra.gmra.mrb[8].mxu0 %v591_v39  ;;  %666 = vmatmul.mubr.bf16.vlgmr.msra.gmra.mrb[8].mxu1 %v591_v39 }
 0x241   :  { %707 = vmatpush1.bf16.msra.mxu0 %v1622_v59  ;;  %748 = vmatpush1.bf16.msra.mxu1 %v1629_v62 }
 0x242   :  { %708 = vmatprep.subr.bf16.mxu0 %v1624_v60  ;;  %749 = vmatprep.subr.bf16.mxu1 %v1633_v63 }
 0x243   :  { %738 = vmatprep.mubr.bf16.mxu0 %v1430_v57  ;;  %779 = vmatprep.mubr.bf16.mxu1 %v1430_v57 }
 0x245   :  { %709 = vmatpush1.bf16.msra.mxu0 %v1636_v0  ;;  %750 = vmatpush1.bf16.msra.mxu1 %v1642_v2 }
 0x246   :  { %710 = vmatprep.subr.bf16.mxu0 %v1639_v1  ;;  %751 = vmatprep.subr.bf16.mxu1 %v1644_v3 }
 0x249   :  { %711 = vmatpush1.bf16.msra.mxu0 %v1648_v4  ;;  %752 = vmatpush1.bf16.msra.mxu1 %v1654_v6 }
 0x24a   :  { %712 = vmatprep.subr.bf16.mxu0 %v1651_v5  ;;  %753 = vmatprep.subr.bf16.mxu1 %v1656_v7 }
 0x24d   :  { %713 = vmatpush1.bf16.msra.mxu0 %v1660_v8  ;;  %754 = vmatpush1.bf16.msra.mxu1 %v1666_v10 }
 0x24e   :  { %714 = vmatprep.subr.bf16.mxu0 %v1663_v9  ;;  %755 = vmatprep.subr.bf16.mxu1 %v1668_v11 }
 0x251   :  { %715 = vmatpush1.bf16.msra.mxu0 %v1672_v12  ;;  %756 = vmatpush1.bf16.msra.mxu1 %v1678_v14 }
 0x252   :  { %716 = vmatprep.subr.bf16.mxu0 %v1675_v13  ;;  %757 = vmatprep.subr.bf16.mxu1 %v1680_v15 }
 0x255   :  { %717 = vmatpush1.bf16.msra.mxu0 %v1684_v16  ;;  %758 = vmatpush1.bf16.msra.mxu1 %v1690_v18 }
 0x256   :  { %718 = vmatprep.subr.bf16.mxu0 %v1687_v17  ;;  %759 = vmatprep.subr.bf16.mxu1 %v1692_v19 }
 0x259   :  { %719 = vmatpush1.bf16.msra.mxu0 %v1696_v20  ;;  %760 = vmatpush1.bf16.msra.mxu1 %v1702_v22 }
 0x25a   :  { %720 = vmatprep.subr.bf16.mxu0 %v1699_v21  ;;  %761 = vmatprep.subr.bf16.mxu1 %v1704_v23 }
 0x25d   :  { %721 = vmatpush1.bf16.msra.mxu0 %v1708_v24  ;;  %762 = vmatpush1.bf16.msra.mxu1 %v1712_v25 }
 0x25e   :  { %820 = vmatprep.subr.bf16.mxu0 %v1620_v58  ;;  %861 = vmatprep.subr.bf16.mxu1 %v1627_v61 }
 0x313   :  { %v626_v43 = vpop.f32.mrb[8].mxu0  ;;  %v667_v44 = vpop.f32.mrb[8].mxu1 }
 0x314   :  { %v674_v45 = vadd.f32 %v626_v43, %v587_v40  ;;  %v628_v47 = vpop.f32.mrb[9].mxu0  ;;  %v669_v48 = vpop.f32.mrb[9].mxu1  ;;  %v676_v56 = vadd.f32 %v667_v44, %v589_v46 }
 0x315   :  { %v675_v49 = vadd.f32 %v628_v47, %v588_v42  ;;  %v630_v50 = vpop.f32.mrb[10].mxu0  ;;  %v671_v51 = vpop.f32.mrb[10].mxu1  ;;  %v677_v28 = vadd.f32 %v669_v48, %v590_v27  ;;  %v1301_v47 = vld [vmem:[%s2020_s0 + $0x38] sm:$0xff] }
 0x316   :  { %v678_v52 = vmul.f32 0.5, %v674_v45  ;;  %v631_v53 = vpop.f32.mrb[11].mxu0  ;;  %v672_v54 = vpop.f32.mrb[11].mxu1 }
 0x317   :  { %v682_v55 = vmul.f32 0.5, %v675_v49  ;;  %v687_v29 = vmul.f32 0.5, %v677_v28 }
 0x318   :  { %1338 = vtanh.f32 %v678_v52  ;;  %v703_v52 = vunpack.c.l.bf16 %v1301_v47 }
 0x319   :  { %1340 = vtanh.f32 %v682_v55 }
 0x31a   :  { %1342 = vtanh.f32 %v676_v56 }
 0x31b   :  { %1344 = vtanh.f32 %v687_v29 }
 0x322   :  { %v1339_v30 = vpop.eup %1338 }
 0x323   :  { %v1341_v31 = vpop.eup %1340  ;;  %v680_v32 = vadd.f32 1.0, %v1339_v30 }
 0x324   :  { %v684_v34 = vadd.f32 1.0, %v1341_v31  ;;  %v1343_v36 = vpop.eup %1342 }
 0x325   :  { %v681_v35 = vmul.f32 0.5, %v680_v32  ;;  %v1345_v40 = vpop.eup %1344 }
 0x326   :  { %v685_v37 = vmul.f32 0.5, %v684_v34  ;;  %v689_v41 = vadd.f32 1.0, %v1345_v40  ;;  %v704_v34 = vunpack.c.h.bf16 %v1301_v47 }
 0x327   :  { %v692_v38 = vmul.f32 %v1343_v36, %v681_v35 }
 0x328   :  { %v691_v39 = vmul.f32 %v685_v37, %v1805_v33  ;;  %v690_v42 = vmul.f32 0.5, %v689_v41  ;;  %v1300_v33 = vld [vmem:[%s2020_s0 + $0x30] sm:$0xff] }
 0x329   :  { %v701_v46 = vunpack.c.l.bf16 %v1300_v33  ;;  %v702_v48 = vunpack.c.h.bf16 %v1300_v33 }
 0x32a   :  { %v1852_v26 = vadd.f32 %v692_v38, %v691_v39 }
 0x32c   :  { %1346 = vtanh.f32 %v1852_v26 }
 0x336   :  { %v1347_v43 = vpop.eup %1346 }
 0x337   :  { %v695_v44 = vmul.f32 %v1347_v43, %v690_v42 }
 0x339   :  { %1299 = vst [vmem:[%s2022_s2 + $0x10] sm:$0xff] %v695_v44  ;;  %v705_v45 = vpack.c.bf16 %v695_v44, %v695_v44 }
 0x33b   :  { %739 = vmatmul.mubr.bf16.vlgmr.msra.gmra.mrb[12].mxu0 %v705_v45  ;;  %780 = vmatmul.mubr.bf16.vlgmr.msra.gmra.mrb[12].mxu1 %v705_v45 }
 0x33c   :  { %821 = vmatpush1.bf16.msra.mxu0 %v1622_v59  ;;  %862 = vmatpush1.bf16.msra.mxu1 %v1629_v62 }
 0x33d   :  { %822 = vmatprep.subr.bf16.mxu0 %v1624_v60  ;;  %863 = vmatprep.subr.bf16.mxu1 %v1633_v63 }
 0x33e   :  { %852 = vmatprep.mubr.bf16.mxu0 %v1430_v57  ;;  %893 = vmatprep.mubr.bf16.mxu1 %v1430_v57 }
 0x340   :  { %823 = vmatpush1.bf16.msra.mxu0 %v1636_v0  ;;  %864 = vmatpush1.bf16.msra.mxu1 %v1642_v2 }
 0x341   :  { %824 = vmatprep.subr.bf16.mxu0 %v1639_v1  ;;  %865 = vmatprep.subr.bf16.mxu1 %v1644_v3 }
 0x344   :  { %825 = vmatpush1.bf16.msra.mxu0 %v1648_v4  ;;  %866 = vmatpush1.bf16.msra.mxu1 %v1654_v6 }
 0x345   :  { %826 = vmatprep.subr.bf16.mxu0 %v1651_v5  ;;  %867 = vmatprep.subr.bf16.mxu1 %v1656_v7 }
 0x348   :  { %827 = vmatpush1.bf16.msra.mxu0 %v1660_v8  ;;  %868 = vmatpush1.bf16.msra.mxu1 %v1666_v10 }
 0x349   :  { %828 = vmatprep.subr.bf16.mxu0 %v1663_v9  ;;  %869 = vmatprep.subr.bf16.mxu1 %v1668_v11 }
 0x34c   :  { %829 = vmatpush1.bf16.msra.mxu0 %v1672_v12  ;;  %870 = vmatpush1.bf16.msra.mxu1 %v1678_v14 }
 0x34d   :  { %830 = vmatprep.subr.bf16.mxu0 %v1675_v13  ;;  %871 = vmatprep.subr.bf16.mxu1 %v1680_v15 }
 0x350   :  { %831 = vmatpush1.bf16.msra.mxu0 %v1684_v16  ;;  %872 = vmatpush1.bf16.msra.mxu1 %v1690_v18 }
 0x351   :  { %832 = vmatprep.subr.bf16.mxu0 %v1687_v17  ;;  %873 = vmatprep.subr.bf16.mxu1 %v1692_v19 }
 0x354   :  { %833 = vmatpush1.bf16.msra.mxu0 %v1696_v20  ;;  %874 = vmatpush1.bf16.msra.mxu1 %v1702_v22 }
 0x355   :  { %834 = vmatprep.subr.bf16.mxu0 %v1699_v21  ;;  %875 = vmatprep.subr.bf16.mxu1 %v1704_v23 }
 0x358   :  { %835 = vmatpush1.bf16.msra.mxu0 %v1708_v24  ;;  %876 = vmatpush1.bf16.msra.mxu1 %v1712_v25 }
 0x359   :  { %934 = vmatprep.subr.bf16.mxu0 %v1620_v58  ;;  %975 = vmatprep.subr.bf16.mxu1 %v1627_v61 }
 0x40e   :  { %v740_v49 = vpop.f32.mrb[12].mxu0  ;;  %v781_v50 = vpop.f32.mrb[12].mxu1 }
 0x40f   :  { %v788_v51 = vadd.f32 %v740_v49, %v701_v46  ;;  %v742_v53 = vpop.f32.mrb[13].mxu0  ;;  %v783_v54 = vpop.f32.mrb[13].mxu1  ;;  %v790_v32 = vadd.f32 %v781_v50, %v703_v52 }
 0x410   :  { %v789_v55 = vadd.f32 %v742_v53, %v702_v48  ;;  %v744_v56 = vpop.f32.mrb[14].mxu0  ;;  %v785_v27 = vpop.f32.mrb[14].mxu1  ;;  %v791_v35 = vadd.f32 %v783_v54, %v704_v34  ;;  %v1304_v53 = vld [vmem:[%s2020_s0 + $0x48] sm:$0xff] }
 0x411   :  { %v792_v28 = vmul.f32 0.5, %v788_v51  ;;  %v745_v29 = vpop.f32.mrb[15].mxu0  ;;  %v786_v30 = vpop.f32.mrb[15].mxu1 }
 0x412   :  { %v796_v31 = vmul.f32 0.5, %v789_v55  ;;  %v801_v36 = vmul.f32 0.5, %v791_v35 }
 0x413   :  { %1348 = vtanh.f32 %v792_v28  ;;  %v817_v28 = vunpack.c.l.bf16 %v1304_v53 }
 0x414   :  { %1350 = vtanh.f32 %v796_v31 }
 0x415   :  { %1352 = vtanh.f32 %v790_v32 }
 0x416   :  { %1354 = vtanh.f32 %v801_v36 }
 0x41d   :  { %v1349_v37 = vpop.eup %1348 }
 0x41e   :  { %v1351_v38 = vpop.eup %1350  ;;  %v794_v39 = vadd.f32 1.0, %v1349_v37 }
 0x41f   :  { %v798_v40 = vadd.f32 1.0, %v1351_v38  ;;  %v1353_v42 = vpop.eup %1352 }
 0x420   :  { %v795_v41 = vmul.f32 0.5, %v794_v39  ;;  %v1355_v46 = vpop.eup %1354 }
 0x421   :  { %v799_v43 = vmul.f32 0.5, %v798_v40  ;;  %v803_v47 = vadd.f32 1.0, %v1355_v46  ;;  %v818_v40 = vunpack.c.h.bf16 %v1304_v53 }
 0x422   :  { %v806_v44 = vmul.f32 %v1353_v42, %v795_v41 }
 0x423   :  { %v805_v45 = vmul.f32 %v799_v43, %v1852_v26  ;;  %v804_v48 = vmul.f32 0.5, %v803_v47  ;;  %v1303_v26 = vld [vmem:[%s2020_s0 + $0x40] sm:$0xff] }
 0x424   :  { %v815_v52 = vunpack.c.l.bf16 %v1303_v26  ;;  %v816_v54 = vunpack.c.h.bf16 %v1303_v26 }
 0x425   :  { %v1899_v33 = vadd.f32 %v806_v44, %v805_v45 }
 0x427   :  { %1356 = vtanh.f32 %v1899_v33 }
 0x431   :  { %v1357_v49 = vpop.eup %1356 }
 0x432   :  { %v809_v50 = vmul.f32 %v1357_v49, %v804_v48 }
 0x434   :  { %1302 = vst [vmem:[%s2022_s2 + $0x18] sm:$0xff] %v809_v50  ;;  %v819_v51 = vpack.c.bf16 %v809_v50, %v809_v50 }
 0x436   :  { %853 = vmatmul.mubr.bf16.vlgmr.msra.gmra.mrb[16].mxu0 %v819_v51  ;;  %894 = vmatmul.mubr.bf16.vlgmr.msra.gmra.mrb[16].mxu1 %v819_v51 }
 0x437   :  { %935 = vmatpush1.bf16.msra.mxu0 %v1622_v59  ;;  %976 = vmatpush1.bf16.msra.mxu1 %v1629_v62 }
 0x438   :  { %936 = vmatprep.subr.bf16.mxu0 %v1624_v60  ;;  %977 = vmatprep.subr.bf16.mxu1 %v1633_v63 }
 0x439   :  { %966 = vmatprep.mubr.bf16.mxu0 %v1430_v57  ;;  %1007 = vmatprep.mubr.bf16.mxu1 %v1430_v57 }
 0x43b   :  { %937 = vmatpush1.bf16.msra.mxu0 %v1636_v0  ;;  %978 = vmatpush1.bf16.msra.mxu1 %v1642_v2 }
 0x43c   :  { %938 = vmatprep.subr.bf16.mxu0 %v1639_v1  ;;  %979 = vmatprep.subr.bf16.mxu1 %v1644_v3 }
 0x43f   :  { %939 = vmatpush1.bf16.msra.mxu0 %v1648_v4  ;;  %980 = vmatpush1.bf16.msra.mxu1 %v1654_v6 }
 0x440   :  { %940 = vmatprep.subr.bf16.mxu0 %v1651_v5  ;;  %981 = vmatprep.subr.bf16.mxu1 %v1656_v7 }
 0x443   :  { %941 = vmatpush1.bf16.msra.mxu0 %v1660_v8  ;;  %982 = vmatpush1.bf16.msra.mxu1 %v1666_v10 }
 0x444   :  { %942 = vmatprep.subr.bf16.mxu0 %v1663_v9  ;;  %983 = vmatprep.subr.bf16.mxu1 %v1668_v11 }
 0x447   :  { %943 = vmatpush1.bf16.msra.mxu0 %v1672_v12  ;;  %984 = vmatpush1.bf16.msra.mxu1 %v1678_v14 }
 0x448   :  { %944 = vmatprep.subr.bf16.mxu0 %v1675_v13  ;;  %985 = vmatprep.subr.bf16.mxu1 %v1680_v15 }
 0x44b   :  { %945 = vmatpush1.bf16.msra.mxu0 %v1684_v16  ;;  %986 = vmatpush1.bf16.msra.mxu1 %v1690_v18 }
 0x44c   :  { %946 = vmatprep.subr.bf16.mxu0 %v1687_v17  ;;  %987 = vmatprep.subr.bf16.mxu1 %v1692_v19 }
 0x44f   :  { %947 = vmatpush1.bf16.msra.mxu0 %v1696_v20  ;;  %988 = vmatpush1.bf16.msra.mxu1 %v1702_v22 }
 0x450   :  { %948 = vmatprep.subr.bf16.mxu0 %v1699_v21  ;;  %989 = vmatprep.subr.bf16.mxu1 %v1704_v23 }
 0x453   :  { %949 = vmatpush1.bf16.msra.mxu0 %v1708_v24  ;;  %990 = vmatpush1.bf16.msra.mxu1 %v1712_v25 }
 0x454   :  { %1048 = vmatprep.subr.bf16.mxu0 %v1620_v58  ;;  %1089 = vmatprep.subr.bf16.mxu1 %v1627_v61 }
 0x509   :  { %v854_v55 = vpop.f32.mrb[16].mxu0  ;;  %v895_v56 = vpop.f32.mrb[16].mxu1 }
 0x50a   :  { %v902_v27 = vadd.f32 %v854_v55, %v815_v52  ;;  %v856_v29 = vpop.f32.mrb[17].mxu0  ;;  %v897_v30 = vpop.f32.mrb[17].mxu1  ;;  %v904_v39 = vadd.f32 %v895_v56, %v817_v28 }
 0x50b   :  { %v903_v31 = vadd.f32 %v856_v29, %v816_v54  ;;  %v858_v32 = vpop.f32.mrb[18].mxu0  ;;  %v899_v34 = vpop.f32.mrb[18].mxu1  ;;  %v905_v41 = vadd.f32 %v897_v30, %v818_v40  ;;  %v1405_v40 = vld [vmem:[#allocation4 + $0x58] sm:$0xff] }
 0x50c   :  { %v906_v35 = vmul.f32 0.5, %v902_v27  ;;  %v859_v36 = vpop.f32.mrb[19].mxu0  ;;  %v900_v37 = vpop.f32.mrb[19].mxu1  ;;  %v1398_v32 = vld [vmem:[#allocation4] sm:$0xff]  ;;  %v1399_v34 = vld [vmem:[#allocation4 + $0x10] sm:$0xff] }
 0x50d   :  { %v910_v38 = vmul.f32 0.5, %v903_v31  ;;  %v915_v42 = vmul.f32 0.5, %v905_v41  ;;  %v1401_v36 = vld [vmem:[#allocation4 + $0x38] sm:$0xff]  ;;  %v1402_v37 = vld [vmem:[#allocation4 + $0x20] sm:$0xff] }
 0x50e   :  { %1358 = vtanh.f32 %v906_v35  ;;  %v1400_v35 = vld [vmem:[#allocation4 + $0x28] sm:$0xff]  ;;  %v1406_v41 = vld [vmem:[#allocation4 + $0x40] sm:$0xff] }
 0x50f   :  { %1360 = vtanh.f32 %v910_v38  ;;  %v1403_v38 = vld [vmem:[#allocation4 + $0x30] sm:$0xff] }
 0x510   :  { %1362 = vtanh.f32 %v904_v39  ;;  %v1404_v39 = vld [vmem:[#allocation4 + $0x48] sm:$0xff] }
 0x511   :  { %1364 = vtanh.f32 %v915_v42  ;;  %v1407_v42 = vld [vmem:[#allocation4 + $0x50] sm:$0xff] }
 0x518   :  { %v1359_v43 = vpop.eup %1358 }
 0x519   :  { %v1361_v44 = vpop.eup %1360  ;;  %v908_v45 = vadd.f32 1.0, %v1359_v43  ;;  %v1408_v43 = vld [vmem:[#allocation4 + $0x68] sm:$0xff] }
 0x51a   :  { %v912_v46 = vadd.f32 1.0, %v1361_v44  ;;  %v1363_v48 = vpop.eup %1362  ;;  %v1409_v44 = vld [vmem:[#allocation4 + $0x78] sm:$0xff] }
 0x51b   :  { %v909_v47 = vmul.f32 0.5, %v908_v45  ;;  %v1365_v52 = vpop.eup %1364  ;;  %v1410_v45 = vld [vmem:[#allocation4 + $0x60] sm:$0xff] }
 0x51c   :  { %v913_v49 = vmul.f32 0.5, %v912_v46  ;;  %v917_v53 = vadd.f32 1.0, %v1365_v52  ;;  %v1411_v46 = vld [vmem:[#allocation4 + $0x70] sm:$0xff] }
 0x51d   :  { %v920_v50 = vmul.f32 %v1363_v48, %v909_v47  ;;  %v1413_v47 = vld [vmem:[#allocation4 + $0x98] sm:$0xff]  ;;  %v1414_v48 = vld [vmem:[#allocation4 + $0x80] sm:$0xff]  ;;  %v1419_v52 = vld [vmem:[#allocation4 + $0xb0] sm:$0xff] }
 0x51e   :  { %v919_v51 = vmul.f32 %v913_v49, %v1899_v33  ;;  %v918_v54 = vmul.f32 0.5, %v917_v53  ;;  %v1415_v49 = vld [vmem:[#allocation4 + $0x90] sm:$0xff]  ;;  %v1420_v53 = vld [vmem:[#allocation4 + $0xc8] sm:$0xff] }
 0x520   :  { %v1946_v26 = vadd.f32 %v920_v50, %v919_v51  ;;  %v1416_v50 = vld [vmem:[#allocation4 + $0xa8] sm:$0xff]  ;;  %v1417_v51 = vld [vmem:[#allocation4 + $0xb8] sm:$0xff] }
 0x522   :  { %1366 = vtanh.f32 %v1946_v26 }
 0x52c   :  { %v1367_v55 = vpop.eup %1366 }
 0x52d   :  { %v923_v56 = vmul.f32 %v1367_v55, %v918_v54  ;;  %v1421_v54 = vld [vmem:[#allocation4 + $0xd8] sm:$0xff]  ;;  %v1422_v55 = vld [vmem:[#allocation4 + $0xc0] sm:$0xff] }
 0x52f   :  { %1305 = vst [vmem:[%s2022_s2 + $0x20] sm:$0xff] %v923_v56  ;;  %v933_v27 = vpack.c.bf16 %v923_v56, %v923_v56  ;;  %v1423_v56 = vld [vmem:[#allocation4 + $0xd0] sm:$0xff] }
 0x531   :  { %967 = vmatmul.mubr.bf16.vlgmr.msra.gmra.mrb[20].mxu0 %v933_v27  ;;  %1008 = vmatmul.mubr.bf16.vlgmr.msra.gmra.mrb[20].mxu1 %v933_v27  ;;  %v1424_v27 = vld [vmem:[#allocation4 + $0xe8] sm:$0xff] }
 0x532   :  { %1049 = vmatpush1.bf16.msra.mxu0 %v1622_v59  ;;  %1090 = vmatpush1.bf16.msra.mxu1 %v1629_v62  ;;  %v1306_v59 = vld [vmem:[%s2020_s0 + $0x50] sm:$0xff]  ;;  %v1307_v62 = vld [vmem:[%s2020_s0 + $0x58] sm:$0xff] }
 0x533   :  { %1050 = vmatprep.subr.bf16.mxu0 %v1624_v60  ;;  %1091 = vmatprep.subr.bf16.mxu1 %v1633_v63  ;;  %v929_v60 = vunpack.c.l.bf16 %v1306_v59  ;;  %v930_v63 = vunpack.c.h.bf16 %v1306_v59  ;;  %v1425_v59 = vld [vmem:[#allocation4 + $0xf8] sm:$0xff] }
 0x534   :  { %1080 = vmatprep.mubr.bf16.mxu0 %v1430_v57  ;;  %1121 = vmatprep.mubr.bf16.mxu1 %v1430_v57 }
 0x536   :  { %1051 = vmatpush1.bf16.msra.mxu0 %v1636_v0  ;;  %1092 = vmatpush1.bf16.msra.mxu1 %v1642_v2 }
 0x537   :  { %1052 = vmatprep.subr.bf16.mxu0 %v1639_v1  ;;  %1093 = vmatprep.subr.bf16.mxu1 %v1644_v3  ;;  %v931_v3 = vunpack.c.l.bf16 %v1307_v62 }
 0x53a   :  { %1053 = vmatpush1.bf16.msra.mxu0 %v1648_v4  ;;  %1094 = vmatpush1.bf16.msra.mxu1 %v1654_v6 }
 0x53b   :  { %1054 = vmatprep.subr.bf16.mxu0 %v1651_v5  ;;  %1095 = vmatprep.subr.bf16.mxu1 %v1656_v7 }
 0x53e   :  { %1055 = vmatpush1.bf16.msra.mxu0 %v1660_v8  ;;  %1096 = vmatpush1.bf16.msra.mxu1 %v1666_v10 }
 0x53f   :  { %1056 = vmatprep.subr.bf16.mxu0 %v1663_v9  ;;  %1097 = vmatprep.subr.bf16.mxu1 %v1668_v11 }
 0x542   :  { %1057 = vmatpush1.bf16.msra.mxu0 %v1672_v12  ;;  %1098 = vmatpush1.bf16.msra.mxu1 %v1678_v14  ;;  %v932_v12 = vunpack.c.h.bf16 %v1307_v62  ;;  %v1427_v62 = vld [vmem:[#allocation4 + $0xf0] sm:$0xff] }
 0x543   :  { %1058 = vmatprep.subr.bf16.mxu0 %v1675_v13  ;;  %1099 = vmatprep.subr.bf16.mxu1 %v1680_v15 }
 0x546   :  { %1059 = vmatpush1.bf16.msra.mxu0 %v1684_v16  ;;  %1100 = vmatpush1.bf16.msra.mxu1 %v1690_v18 }
 0x547   :  { %1060 = vmatprep.subr.bf16.mxu0 %v1687_v17  ;;  %1101 = vmatprep.subr.bf16.mxu1 %v1692_v19 }
 0x54a   :  { %1061 = vmatpush1.bf16.msra.mxu0 %v1696_v20  ;;  %1102 = vmatpush1.bf16.msra.mxu1 %v1702_v22 }
 0x54b   :  { %1062 = vmatprep.subr.bf16.mxu0 %v1699_v21  ;;  %1103 = vmatprep.subr.bf16.mxu1 %v1704_v23 }
 0x54e   :  { %1063 = vmatpush1.bf16.msra.mxu0 %v1708_v24  ;;  %1104 = vmatpush1.bf16.msra.mxu1 %v1712_v25 }
 0x54f   :  { %1162 = vmatprep.subr.bf16.mxu0 %v1620_v58  ;;  %1203 = vmatprep.subr.bf16.mxu1 %v1627_v61 }
 0x604   :  { %v968_v0 = vpop.f32.mrb[20].mxu0  ;;  %v1009_v1 = vpop.f32.mrb[20].mxu1 }
 0x605   :  { %v1016_v2 = vadd.f32 %v968_v0, %v929_v60  ;;  %v970_v4 = vpop.f32.mrb[21].mxu0  ;;  %v1011_v5 = vpop.f32.mrb[21].mxu1  ;;  %v1018_v11 = vadd.f32 %v1009_v1, %v931_v3  ;;  %v1426_v60 = vld [vmem:[#allocation4 + $0xe0] sm:$0xff]  ;;  %v1310_v1 = vld [vmem:[%s2020_s0 + $0x68] sm:$0xff] }
 0x606   :  { %v1017_v6 = vadd.f32 %v970_v4, %v930_v63  ;;  %v972_v58 = vpop.f32.mrb[22].mxu0  ;;  %v1013_v7 = vpop.f32.mrb[22].mxu1  ;;  %v1019_v13 = vadd.f32 %v1011_v5, %v932_v12  ;;  %v1309_v63 = vld [vmem:[%s2020_s0 + $0x60] sm:$0xff] }
 0x607   :  { %v1020_v61 = vmul.f32 0.5, %v1016_v2  ;;  %v973_v8 = vpop.f32.mrb[23].mxu0  ;;  %v1014_v9 = vpop.f32.mrb[23].mxu1  ;;  %v1043_v0 = vunpack.c.l.bf16 %v1309_v63  ;;  %v1044_v2 = vunpack.c.h.bf16 %v1309_v63 }
 0x608   :  { %v1024_v10 = vmul.f32 0.5, %v1017_v6  ;;  %v1029_v14 = vmul.f32 0.5, %v1019_v13  ;;  %v1045_v6 = vunpack.c.l.bf16 %v1310_v1 }
 0x609   :  { %1368 = vtanh.f32 %v1020_v61 }
 0x60a   :  { %1370 = vtanh.f32 %v1024_v10 }
 0x60b   :  { %1372 = vtanh.f32 %v1018_v11 }
 0x60c   :  { %1374 = vtanh.f32 %v1029_v14 }
 0x613   :  { %v1369_v15 = vpop.eup %1368 }
 0x614   :  { %v1371_v16 = vpop.eup %1370  ;;  %v1022_v17 = vadd.f32 1.0, %v1369_v15  ;;  %v1046_v15 = vunpack.c.h.bf16 %v1310_v1 }
 0x615   :  { %v1026_v18 = vadd.f32 1.0, %v1371_v16  ;;  %v1373_v20 = vpop.eup %1372 }
 0x616   :  { %v1023_v19 = vmul.f32 0.5, %v1022_v17  ;;  %v1375_v25 = vpop.eup %1374 }
 0x617   :  { %v1027_v21 = vmul.f32 0.5, %v1026_v18  ;;  %v1031_v33 = vadd.f32 1.0, %v1375_v25 }
 0x618   :  { %v1034_v22 = vmul.f32 %v1373_v20, %v1023_v19 }
 0x619   :  { %v1033_v23 = vmul.f32 %v1027_v21, %v1946_v26  ;;  %v1032_v28 = vmul.f32 0.5, %v1031_v33  ;;  %v1418_v26 = vld [vmem:[#allocation4 + $0xa0] sm:$0xff] }
 0x61b   :  { %v1993_v24 = vadd.f32 %v1034_v22, %v1033_v23 }
 0x61d   :  { %1376 = vtanh.f32 %v1993_v24 }
 0x627   :  { %v1377_v29 = vpop.eup %1376 }
 0x628   :  { %v1037_v30 = vmul.f32 %v1377_v29, %v1032_v28 }
 0x62a   :  { %1308 = vst [vmem:[%s2022_s2 + $0x28] sm:$0xff] %v1037_v30  ;;  %v1047_v31 = vpack.c.bf16 %v1037_v30, %v1037_v30 }
 0x62c   :  { %1081 = vmatmul.mubr.bf16.vlgmr.msra.gmra.mrb[24].mxu0 %v1047_v31  ;;  %1122 = vmatmul.mubr.bf16.vlgmr.msra.gmra.mrb[24].mxu1 %v1047_v31 }
 0x62d   :  { %1163 = vmatpush1.bf16.msra.mxu0 %v1398_v32  ;;  %1204 = vmatpush1.bf16.msra.mxu1 %v1399_v34 }
 0x62e   :  { %1164 = vmatprep.subr.bf16.mxu0 %v1400_v35  ;;  %1205 = vmatprep.subr.bf16.mxu1 %v1401_v36 }
 0x62f   :  { %1194 = vmatprep.mubr.bf16.mxu0 %v1430_v57  ;;  %1235 = vmatprep.mubr.bf16.mxu1 %v1430_v57  ;;  %v1412_v57 = vld [vmem:[#allocation4 + $0x88] sm:$0xff] }
 0x631   :  { %1165 = vmatpush1.bf16.msra.mxu0 %v1402_v37  ;;  %1206 = vmatpush1.bf16.msra.mxu1 %v1403_v38  ;;  %v1312_v37 = vld [vmem:[%s2020_s0 + $0x70] sm:$0xff] }
 0x632   :  { %1166 = vmatprep.subr.bf16.mxu0 %v1404_v39  ;;  %1207 = vmatprep.subr.bf16.mxu1 %v1405_v40  ;;  %v1157_v38 = vunpack.c.l.bf16 %v1312_v37  ;;  %v1158_v39 = vunpack.c.h.bf16 %v1312_v37 }
 0x635   :  { %1167 = vmatpush1.bf16.msra.mxu0 %v1406_v41  ;;  %1208 = vmatpush1.bf16.msra.mxu1 %v1407_v42 }
 0x636   :  { %1168 = vmatprep.subr.bf16.mxu0 %v1408_v43  ;;  %1209 = vmatprep.subr.bf16.mxu1 %v1409_v44 }
 0x639   :  { %1169 = vmatpush1.bf16.msra.mxu0 %v1410_v45  ;;  %1210 = vmatpush1.bf16.msra.mxu1 %v1411_v46 }
 0x63a   :  { %1170 = vmatprep.subr.bf16.mxu0 %v1412_v57  ;;  %1211 = vmatprep.subr.bf16.mxu1 %v1413_v47 }
 0x63d   :  { %1171 = vmatpush1.bf16.msra.mxu0 %v1414_v48  ;;  %1212 = vmatpush1.bf16.msra.mxu1 %v1415_v49 }
 0x63e   :  { %1172 = vmatprep.subr.bf16.mxu0 %v1416_v50  ;;  %1213 = vmatprep.subr.bf16.mxu1 %v1417_v51 }
 0x641   :  { %1173 = vmatpush1.bf16.msra.mxu0 %v1418_v26  ;;  %1214 = vmatpush1.bf16.msra.mxu1 %v1419_v52 }
 0x642   :  { %1174 = vmatprep.subr.bf16.mxu0 %v1420_v53  ;;  %1215 = vmatprep.subr.bf16.mxu1 %v1421_v54 }
 0x645   :  { %1175 = vmatpush1.bf16.msra.mxu0 %v1422_v55  ;;  %1216 = vmatpush1.bf16.msra.mxu1 %v1423_v56 }
 0x646   :  { %1176 = vmatprep.subr.bf16.mxu0 %v1424_v27  ;;  %1217 = vmatprep.subr.bf16.mxu1 %v1425_v59 }
 0x649   :  { %1177 = vmatpush1.bf16.msra.mxu0 %v1426_v60  ;;  %1218 = vmatpush1.bf16.msra.mxu1 %v1427_v62 }
 0x6ff   :  { %v1082_v3 = vpop.f32.mrb[24].mxu0  ;;  %v1123_v4 = vpop.f32.mrb[24].mxu1 }
 0x700   :  { %v1130_v5 = vadd.f32 %v1082_v3, %v1043_v0  ;;  %v1084_v58 = vpop.f32.mrb[25].mxu0  ;;  %v1125_v7 = vpop.f32.mrb[25].mxu1  ;;  %v1132_v14 = vadd.f32 %v1123_v4, %v1045_v6 }
 0x701   :  { %v1131_v61 = vadd.f32 %v1084_v58, %v1044_v2  ;;  %v1086_v8 = vpop.f32.mrb[26].mxu0  ;;  %v1127_v9 = vpop.f32.mrb[26].mxu1  ;;  %v1133_v16 = vadd.f32 %v1125_v7, %v1046_v15 }
 0x702   :  { %v1134_v10 = vmul.f32 0.5, %v1130_v5  ;;  %v1087_v11 = vpop.f32.mrb[27].mxu0  ;;  %v1128_v12 = vpop.f32.mrb[27].mxu1 }
 0x703   :  { %v1138_v13 = vmul.f32 0.5, %v1131_v61  ;;  %v1143_v17 = vmul.f32 0.5, %v1133_v16 }
 0x704   :  { %1378 = vtanh.f32 %v1134_v10 }
 0x705   :  { %1380 = vtanh.f32 %v1138_v13 }
 0x706   :  { %1382 = vtanh.f32 %v1132_v14 }
 0x707   :  { %1384 = vtanh.f32 %v1143_v17 }
 0x70e   :  { %v1379_v18 = vpop.eup %1378 }
 0x70f   :  { %v1381_v19 = vpop.eup %1380  ;;  %v1136_v20 = vadd.f32 1.0, %v1379_v18 }
 0x710   :  { %v1140_v21 = vadd.f32 1.0, %v1381_v19  ;;  %v1383_v23 = vpop.eup %1382 }
 0x711   :  { %v1137_v22 = vmul.f32 0.5, %v1136_v20  ;;  %v1385_v30 = vpop.eup %1384 }
 0x712   :  { %v1141_v25 = vmul.f32 0.5, %v1140_v21  ;;  %v1145_v31 = vadd.f32 1.0, %v1385_v30 }
 0x713   :  { %v1148_v33 = vmul.f32 %v1383_v23, %v1137_v22 }
 0x714   :  { %v1147_v28 = vmul.f32 %v1141_v25, %v1993_v24  ;;  %v1146_v32 = vmul.f32 0.5, %v1145_v31  ;;  %v1313_v24 = vld [vmem:[%s2020_s0 + $0x78] sm:$0xff] }
 0x715   :  { %v1159_v43 = vunpack.c.l.bf16 %v1313_v24  ;;  %v1160_v52 = vunpack.c.h.bf16 %v1313_v24 }
 0x716   :  { %v1149_v29 = vadd.f32 %v1148_v33, %v1147_v28 }
 0x718   :  { %1386 = vtanh.f32 %v1149_v29 }
 0x722   :  { %v1387_v34 = vpop.eup %1386 }
 0x723   :  { %v1151_v35 = vmul.f32 %v1387_v34, %v1146_v32 }
 0x725   :  { %1311 = vst [vmem:[%s2022_s2 + $0x30] sm:$0xff] %v1151_v35  ;;  %v1161_v36 = vpack.c.bf16 %v1151_v35, %v1151_v35 }
 0x727   :  { %1195 = vmatmul.mubr.bf16.vlgmr.msra.gmra.mrb[28].mxu0 %v1161_v36  ;;  %1236 = vmatmul.mubr.bf16.vlgmr.msra.gmra.mrb[28].mxu1 %v1161_v36 }
 0x7fa   :  { %v1196_v40 = vpop.f32.mrb[28].mxu0  ;;  %v1237_v41 = vpop.f32.mrb[28].mxu1 }
 0x7fb   :  { %v1244_v42 = vadd.f32 %v1196_v40, %v1157_v38  ;;  %v1198_v44 = vpop.f32.mrb[29].mxu0  ;;  %v1239_v45 = vpop.f32.mrb[29].mxu1  ;;  %v1246_v26 = vadd.f32 %v1237_v41, %v1159_v43 }
 0x7fc   :  { %v1245_v46 = vadd.f32 %v1198_v44, %v1158_v39  ;;  %v1200_v57 = vpop.f32.mrb[30].mxu0  ;;  %v1241_v47 = vpop.f32.mrb[30].mxu1  ;;  %v1247_v53 = vadd.f32 %v1239_v45, %v1160_v52 }
 0x7fd   :  { %v1248_v48 = vmul.f32 0.5, %v1244_v42  ;;  %v1201_v49 = vpop.f32.mrb[31].mxu0  ;;  %v1242_v50 = vpop.f32.mrb[31].mxu1 }
 0x7fe   :  { %v1252_v51 = vmul.f32 0.5, %v1245_v46  ;;  %v1257_v54 = vmul.f32 0.5, %v1247_v53 }
 0x7ff   :  { %1388 = vtanh.f32 %v1248_v48 }
 0x800   :  { %1390 = vtanh.f32 %v1252_v51 }
 0x801   :  { %1392 = vtanh.f32 %v1246_v26 }
 0x802   :  { %1394 = vtanh.f32 %v1257_v54 }
 0x809   :  { %v1389_v55 = vpop.eup %1388 }
 0x80a   :  { %v1391_v56 = vpop.eup %1390  ;;  %v1250_v27 = vadd.f32 1.0, %v1389_v55 }
 0x80b   :  { %v1254_v59 = vadd.f32 1.0, %v1391_v56  ;;  %v1393_v62 = vpop.eup %1392 }
 0x80c   :  { %v1251_v60 = vmul.f32 0.5, %v1250_v27  ;;  %v1395_v3 = vpop.eup %1394 }
 0x80d   :  { %v1255_v63 = vmul.f32 0.5, %v1254_v59  ;;  %v1259_v4 = vadd.f32 1.0, %v1395_v3 }
 0x80e   :  { %v1262_v0 = vmul.f32 %v1393_v62, %v1251_v60 }
 0x80f   :  { %v1261_v1 = vmul.f32 %v1255_v63, %v1149_v29  ;;  %v1260_v5 = vmul.f32 0.5, %v1259_v4 }
 0x811   :  { %v1263_v2 = vadd.f32 %v1262_v0, %v1261_v1 }
 0x813   :  { %1396 = vtanh.f32 %v1263_v2 }
 0x81d   :  { %v1397_v6 = vpop.eup %1396 }
 0x81e   :  { %v1265_v58 = vmul.f32 %v1397_v6, %v1260_v5 }
 0x820   :  { %1314 = vst [vmem:[%s2022_s2 + $0x38] sm:$0xff] %v1265_v58 }
 0x821   :  { %1274 = vsyncmov [#allocation5] }
 0x824   :  { %s1275_s28 = vpop.sfrf %1274 }
 0x825   :  { %p1315_p0 = scmp.ne.s32.totalorder %s1275_s28, 0 }
 0x827   :  { %1279 = shalt.err (%p1315_p0)  }

</bundles_post_ra>
